<compile_context>
chip_gen: v7x
topology: tpu7x:2x2x1
jax: 0.10.0
libtpu: 0.0.40
codegen_flags: <defaults>
</compile_context>

<pallas_src>
import functools

import jax
import jax.numpy as jnp
from jax import lax
from jax.experimental import pallas as pl
from jax.experimental.pallas import tpu as pltpu


def _round_up(n, m=128):
    return ((n + m - 1) // m) * m


def _device_profile():
    """Per-generation policy: (vmem_budget_bytes, prefer_multi_step, act_dtype)."""
    try:
        kind = jax.devices()[0].device_kind.lower()
    except Exception:
        kind = ""
    is_v7 = ("v7" in kind) or ("7x" in kind)
    is_v5 = "v5" in kind
    # v7x: 64 MiB physical VMEM per TC -> 48 MiB budget; v5e/v6e: 128 MiB -> 100 MiB.
    vmem_budget = (48 << 20) if is_v7 else (100 << 20)
    # Only v7x has 2 TensorCores/chip; splitting the batch axis helps only there.
    prefer_multi_step = is_v7
    # v5e VPU has no bf16: keep f32 activations there; bf16 on v6e/v7x.
    act_dtype = jnp.float32 if is_v5 else jnp.bfloat16
    return vmem_budget, prefer_multi_step, act_dtype


def _discriminator_kernel(seed_ref, x_ref,
                          w0_ref, b0_ref, w1_ref, b1_ref,
                          w2_ref, b2_ref, w3_ref, b3_ref,
                          o_ref, *, leaky, dropout, training, act_dtype):
    """One batch-tile of the discriminator forward pass.

    seed_ref : SMEM (1,) int32 scalar-prefetch ref (used only when training=True)
    x_ref    : VMEM (TB, in_features)
    wK_ref   : VMEM (fan_in_pad, fan_out_pad) bf16   bK_ref : VMEM (1, fan_out_pad) f32
    w3_ref   : VMEM (1, last_hidden_pad)      bf16   b3_ref : VMEM (1, 1) f32
    o_ref    : VMEM (1, TB) f32   (lane-dense output row)
    """
    use_dropout = training and dropout > 0.0
    if use_dropout:
        # Strong per-(seed, tile) mixing so consecutive caller seeds don't reuse
        # neighbouring tiles' PRNG streams.
        pltpu.prng_seed(seed_ref[0] * jnp.int32(1000003)
                        + pl.program_id(0) * jnp.int32(7919)
                        + jnp.int32(0x5BD1))

    inv_keep = 1.0 / (1.0 - dropout) if dropout < 1.0 else 0.0
    threshold = min(int(dropout * 4294967296.0), 4294967295)

    def hidden(h, w_ref, b_ref):
        # Linear: bf16 inputs on the MXU, f32 accumulation, f32 bias add.
        acc = jnp.dot(h.astype(w_ref.dtype), w_ref[...],
                      preferred_element_type=jnp.float32) + b_ref[...]
        # LeakyReLU + inverted dropout fused into one multiplicative scale.
        scale = jnp.where(acc > 0, 1.0, leaky)
        if use_dropout:
            # TODO(synk): could halve PRNG volume with 16-bit thresholds; kept
            # 32-bit compares since training mode is hardware-only anyway.
            bits = pltpu.bitcast(pltpu.prng_random_bits(acc.shape), jnp.uint32)
            keep = bits >= jnp.uint32(threshold)       # P(keep) = 1 - dropout
            scale = scale * jnp.where(keep, inv_keep, 0.0)
        # Carry activations at act_dtype (bf16 on v6e/v7x, f32 on v5e).
        return (acc * scale).astype(act_dtype)

    h = x_ref[...]
    h = hidden(h, w0_ref, b0_ref)
    h = hidden(h, w1_ref, b1_ref)
    h = hidden(h, w2_ref, b2_ref)

    # Output layer Linear(H, 1) + Sigmoid, emitted lane-dense as a (1, TB) row:
    # (1, H) contracted with (TB, H) over H on the MXU.
    logits = lax.dot_general(
        w3_ref[...], h.astype(w3_ref.dtype),
        dimension_numbers=(((1,), (1,)), ((), ())),
        preferred_element_type=jnp.float32) + b3_ref[...]
    o_ref[...] = jax.nn.sigmoid(logits)


def _pick_batch_tile(batch, in_features, x_itemsize, max_hidden_pad,
                     weight_bytes, vmem_budget, prefer_multi_step):
    def fits(t):
        x_bytes = 2 * t * in_features * x_itemsize      # double-buffered x block
        out_bytes = 2 * t * 4                           # double-buffered (1, t) out
        act_bytes = 3 * t * max_hidden_pad * 4          # live activations, f32 worst case
        return 2 * weight_bytes + x_bytes + out_bytes + act_bytes <= vmem_budget

    divisors = [t for t in (4096, 2048, 1024, 512, 256, 128)
                if t <= batch and batch % t == 0 and fits(t)]
    if prefer_multi_step:
        multi = [t for t in divisors if batch // t >= 2]
        if multi:
            return multi[0]
    if divisors:
        return divisors[0]
    return batch   # full-array block fallback (legal; perf cliff only)


def discriminator_forward(x, params, *, leaky=0.2, dropout=0.3,
                          training=False, seed=0, batch_tile=None,
                          weight_dtype=jnp.bfloat16, activation_dtype=None):
    """Run the DiscriminatorNet forward pass with a single pallas_call."""
    B, in_features = x.shape
    vmem_budget, prefer_multi_step, auto_act = _device_profile()
    act_dtype = auto_act if activation_dtype is None else activation_dtype

    (w0, b0), (w1, b1), (w2, b2), (w3, b3) = params
    h0, h1, h2 = w0.shape[1], w1.shape[1], w2.shape[1]
    p0, p1, p2 = _round_up(h0), _round_up(h1), _round_up(h2)

    def pad2(w, rows, cols):
        w = jnp.asarray(w, jnp.float32)
        return jnp.pad(w, ((0, rows - w.shape[0]), (0, cols - w.shape[1])))

    # Zero-pad sub-128 hidden widths to full 128-lane density (exact math).
    # bf16 weights halve the resident-weight footprint; accumulation stays f32.
    w0p = pad2(w0, in_features, p0).astype(weight_dtype)
    w1p = pad2(w1, p0, p1).astype(weight_dtype)
    w2p = pad2(w2, p1, p2).astype(weight_dtype)
    w3p = pad2(jnp.asarray(w3, jnp.float32).reshape(1, -1), 1, p2).astype(weight_dtype)
    b0p = jnp.pad(jnp.asarray(b0, jnp.float32).reshape(1, -1), ((0, 0), (0, p0 - h0)))
    b1p = jnp.pad(jnp.asarray(b1, jnp.float32).reshape(1, -1), ((0, 0), (0, p1 - h1)))
    b2p = jnp.pad(jnp.asarray(b2, jnp.float32).reshape(1, -1), ((0, 0), (0, p2 - h2)))
    b3p = jnp.asarray(b3, jnp.float32).reshape(1, 1)

    weight_bytes = sum(int(a.size) * a.dtype.itemsize
                       for a in (w0p, b0p, w1p, b1p, w2p, b2p, w3p, b3p))
    if batch_tile is None:
        batch_tile = _pick_batch_tile(B, in_features, x.dtype.itemsize,
                                      max(p0, p1, p2), weight_bytes,
                                      vmem_budget, prefer_multi_step)
    assert B % batch_tile == 0, (B, batch_tile)
    grid = (B // batch_tile,)

    seed_arr = jnp.asarray([seed], dtype=jnp.int32)
    kernel = functools.partial(_discriminator_kernel, leaky=leaky, dropout=dropout,
                               training=training, act_dtype=act_dtype)

    def const_spec(a):
        # Same block index every grid step: array stays VMEM-resident, no re-fetch.
        return pl.BlockSpec(a.shape, lambda i, seed: (0,) * a.ndim)

    out = pl.pallas_call(
        kernel,
        out_shape=jax.ShapeDtypeStruct((1, B), jnp.float32),
        grid_spec=pltpu.PrefetchScalarGridSpec(
            num_scalar_prefetch=1,                       # seed -> SMEM
            grid=grid,
            in_specs=[
                pl.BlockSpec((batch_tile, in_features), lambda i, seed: (i, 0)),
                const_spec(w0p), const_spec(b0p),
                const_spec(w1p), const_spec(b1p),
                const_spec(w2p), const_spec(b2p),
                const_spec(w3p), const_spec(b3p),
            ],
            # Lane-dense output: each grid step writes a full 128*k-lane slab.
            out_specs=pl.BlockSpec((1, batch_tile), lambda i, seed: (0, i)),
        ),
        compiler_params=pltpu.CompilerParams(
            dimension_semantics=("parallel",),
            vmem_limit_bytes=vmem_budget,
        ),
    )(seed_arr, x, w0p, b0p, w1p, b1p, w2p, b2p, w3p, b3p)
    # (1, B) row -> (B, 1) column; one dim is 1 so this is a pure reshape.
    return out.reshape(B, 1)


def init_params(key, in_features, hidden_layers=(1024, 512, 256), out_features=1):
    """Deterministic init mimicking nn.Linear default (U(-1/sqrt(fan_in), +))."""
    dims = [in_features, *hidden_layers, out_features]
    params = []
    for fan_in, fan_out in zip(dims[:-1], dims[1:]):
        key, kw, kb = jax.random.split(key, 3)
        bound = 1.0 / (fan_in ** 0.5)
        w = jax.random.uniform(kw, (fan_in, fan_out), jnp.float32, -bound, bound)
        b = jax.random.uniform(kb, (fan_out,), jnp.float32, -bound, bound)
        params.append((w, b))
    return params


def reference_forward(x, params, leaky=0.2, weight_dtype=jnp.bfloat16,
                      activation_dtype=jnp.float32):
    """Pure-JAX reference (eval mode), mirroring the kernel's dtype path."""
    h = x.astype(jnp.float32)
    for w, b in params[:-1]:
        h = jnp.dot(h.astype(weight_dtype), jnp.asarray(w).astype(weight_dtype),
                    preferred_element_type=jnp.float32) + jnp.asarray(b, jnp.float32)
        h = jnp.where(h > 0, h, leaky * h).astype(activation_dtype)
    w, b = params[-1]
    logits = jnp.dot(h.astype(weight_dtype), jnp.asarray(w).astype(weight_dtype),
                     preferred_element_type=jnp.float32) + jnp.asarray(b, jnp.float32)
    return jax.nn.sigmoid(logits)


if __name__ == "__main__":
    key = jax.random.PRNGKey(0)
    k_x, k_p = jax.random.split(key)

    batch, in_features = 256, 64
    hidden_layers = (128, 64, 32)

    x = jax.random.normal(k_x, (batch, in_features), jnp.float32)
    params = init_params(k_p, in_features, hidden_layers)

    # Eval-mode forward (dropout is identity, as in model.eval()).
    y = discriminator_forward(x, params, leaky=0.2, dropout=0.3, training=False)
    y = jax.block_until_ready(y)

    _, _, act_dtype = _device_profile()
    y_ref = reference_forward(x, params, leaky=0.2,
                              weight_dtype=jnp.bfloat16, activation_dtype=act_dtype)
    assert y.shape == (batch, 1)
    max_err = float(jnp.max(jnp.abs(y - y_ref)))
    assert max_err < 1e-2, f"mismatch vs reference: max abs err {max_err}"
    # Note: bf16 weights/activations mean outputs differ slightly from a pure
    # f32 PyTorch forward; pass weight_dtype=activation_dtype=jnp.float32 for
    # exact-parity checks.

    # TODO(synk): training-mode dropout uses the on-chip PRNG
    # (pltpu.prng_seed / prng_random_bits), which has no CPU-interpret lowering,
    # so it is only exercised on real TPU hardware (call with training=True).

    print("KERNEL_OK")
</pallas_src>

<mosaic_0001>
module attributes {stable_mosaic.version = 11 : i64} {
  func.func @_discriminator_kernel(%arg0: i32, %arg1: memref<1xi32, #tpu.memory_space<smem>>, %arg2: memref<256x64xf32, #tpu.memory_space<vmem>>, %arg3: memref<64x128xbf16, #tpu.memory_space<vmem>>, %arg4: memref<1x128xf32, #tpu.memory_space<vmem>>, %arg5: memref<128x128xbf16, #tpu.memory_space<vmem>>, %arg6: memref<1x128xf32, #tpu.memory_space<vmem>>, %arg7: memref<128x128xbf16, #tpu.memory_space<vmem>>, %arg8: memref<1x128xf32, #tpu.memory_space<vmem>>, %arg9: memref<1x128xbf16, #tpu.memory_space<vmem>>, %arg10: memref<1x1xf32, #tpu.memory_space<vmem>>, %arg11: memref<1x256xf32, #tpu.memory_space<vmem>>) attributes {dimension_semantics = [#tpu.dimension_semantics<parallel>], iteration_bounds = array<i64: 1>, scalar_prefetch = 1 : i64, scratch_operands = 0 : i64, tpu.core_type = #tpu.core_type<tc>, window_params = [{transform_indices = @transform_0, window_bounds = array<i64: 256, 64>}, {pipeline_mode = #tpu.pipeline_mode<synchronous>, transform_indices = @transform_1, window_bounds = array<i64: 64, 128>}, {pipeline_mode = #tpu.pipeline_mode<synchronous>, transform_indices = @transform_2, window_bounds = array<i64: 1, 128>}, {pipeline_mode = #tpu.pipeline_mode<synchronous>, transform_indices = @transform_3, window_bounds = array<i64: 128, 128>}, {pipeline_mode = #tpu.pipeline_mode<synchronous>, transform_indices = @transform_4, window_bounds = array<i64: 1, 128>}, {pipeline_mode = #tpu.pipeline_mode<synchronous>, transform_indices = @transform_5, window_bounds = array<i64: 128, 128>}, {pipeline_mode = #tpu.pipeline_mode<synchronous>, transform_indices = @transform_6, window_bounds = array<i64: 1, 128>}, {pipeline_mode = #tpu.pipeline_mode<synchronous>, transform_indices = @transform_7, window_bounds = array<i64: 1, 128>}, {pipeline_mode = #tpu.pipeline_mode<synchronous>, transform_indices = @transform_8, window_bounds = array<i64: 1, 1>}, {transform_indices = @transform_9, window_bounds = array<i64: 1, 256>}]} {
    %c0 = arith.constant 0 : index
    %c0_0 = arith.constant 0 : index
    %0 = vector.load %arg2[%c0, %c0_0] : memref<256x64xf32, #tpu.memory_space<vmem>>, vector<256x64xf32>
    %1 = arith.truncf %0 : vector<256x64xf32> to vector<256x64xbf16>
    %c0_1 = arith.constant 0 : index
    %c0_2 = arith.constant 0 : index
    %2 = vector.load %arg3[%c0_1, %c0_2] : memref<64x128xbf16, #tpu.memory_space<vmem>>, vector<64x128xbf16>
    %cst = arith.constant dense<0.000000e+00> : vector<256x128xf32>
    %3 = tpu.matmul %1, %2, %cst {dimension_numbers = #tpu.dot_dimension_numbers<[1], [0], [0], [1], [0, 0, 1, 1], [], []>} : vector<256x64xbf16>, vector<64x128xbf16>, vector<256x128xf32> -> vector<256x128xf32>
    %c0_3 = arith.constant 0 : index
    %c0_4 = arith.constant 0 : index
    %4 = vector.load %arg4[%c0_3, %c0_4] : memref<1x128xf32, #tpu.memory_space<vmem>>, vector<1x128xf32>
    %5 = vector.broadcast %4 : vector<1x128xf32> to vector<256x128xf32>
    %6 = arith.addf %3, %5 : vector<256x128xf32>
    %cst_5 = arith.constant 0.000000e+00 : f32
    %7 = vector.broadcast %cst_5 : f32 to vector<256x128xf32>
    %8 = arith.cmpf ogt, %6, %7 : vector<256x128xf32>
    %cst_6 = arith.constant 1.000000e+00 : f32
    %cst_7 = arith.constant 2.000000e-01 : f32
    %9 = vector.broadcast %cst_6 : f32 to vector<256x128xf32>
    %10 = vector.broadcast %cst_7 : f32 to vector<256x128xf32>
    %11 = arith.select %8, %9, %10 : vector<256x128xi1>, vector<256x128xf32>
    %12 = arith.mulf %6, %11 : vector<256x128xf32>
    %13 = arith.truncf %12 : vector<256x128xf32> to vector<256x128xbf16>
    %c0_8 = arith.constant 0 : index
    %c0_9 = arith.constant 0 : index
    %14 = vector.load %arg5[%c0_8, %c0_9] : memref<128x128xbf16, #tpu.memory_space<vmem>>, vector<128x128xbf16>
    %cst_10 = arith.constant dense<0.000000e+00> : vector<256x128xf32>
    %15 = tpu.matmul %13, %14, %cst_10 {dimension_numbers = #tpu.dot_dimension_numbers<[1], [0], [0], [1], [0, 0, 1, 1], [], []>} : vector<256x128xbf16>, vector<128x128xbf16>, vector<256x128xf32> -> vector<256x128xf32>
    %c0_11 = arith.constant 0 : index
    %c0_12 = arith.constant 0 : index
    %16 = vector.load %arg6[%c0_11, %c0_12] : memref<1x128xf32, #tpu.memory_space<vmem>>, vector<1x128xf32>
    %17 = vector.broadcast %16 : vector<1x128xf32> to vector<256x128xf32>
    %18 = arith.addf %15, %17 : vector<256x128xf32>
    %cst_13 = arith.constant 0.000000e+00 : f32
    %19 = vector.broadcast %cst_13 : f32 to vector<256x128xf32>
    %20 = arith.cmpf ogt, %18, %19 : vector<256x128xf32>
    %cst_14 = arith.constant 1.000000e+00 : f32
    %cst_15 = arith.constant 2.000000e-01 : f32
    %21 = vector.broadcast %cst_14 : f32 to vector<256x128xf32>
    %22 = vector.broadcast %cst_15 : f32 to vector<256x128xf32>
    %23 = arith.select %20, %21, %22 : vector<256x128xi1>, vector<256x128xf32>
    %24 = arith.mulf %18, %23 : vector<256x128xf32>
    %25 = arith.truncf %24 : vector<256x128xf32> to vector<256x128xbf16>
    %c0_16 = arith.constant 0 : index
    %c0_17 = arith.constant 0 : index
    %26 = vector.load %arg7[%c0_16, %c0_17] : memref<128x128xbf16, #tpu.memory_space<vmem>>, vector<128x128xbf16>
    %cst_18 = arith.constant dense<0.000000e+00> : vector<256x128xf32>
    %27 = tpu.matmul %25, %26, %cst_18 {dimension_numbers = #tpu.dot_dimension_numbers<[1], [0], [0], [1], [0, 0, 1, 1], [], []>} : vector<256x128xbf16>, vector<128x128xbf16>, vector<256x128xf32> -> vector<256x128xf32>
    %c0_19 = arith.constant 0 : index
    %c0_20 = arith.constant 0 : index
    %28 = vector.load %arg8[%c0_19, %c0_20] : memref<1x128xf32, #tpu.memory_space<vmem>>, vector<1x128xf32>
    %29 = vector.broadcast %28 : vector<1x128xf32> to vector<256x128xf32>
    %30 = arith.addf %27, %29 : vector<256x128xf32>
    %cst_21 = arith.constant 0.000000e+00 : f32
    %31 = vector.broadcast %cst_21 : f32 to vector<256x128xf32>
    %32 = arith.cmpf ogt, %30, %31 : vector<256x128xf32>
    %cst_22 = arith.constant 1.000000e+00 : f32
    %cst_23 = arith.constant 2.000000e-01 : f32
    %33 = vector.broadcast %cst_22 : f32 to vector<256x128xf32>
    %34 = vector.broadcast %cst_23 : f32 to vector<256x128xf32>
    %35 = arith.select %32, %33, %34 : vector<256x128xi1>, vector<256x128xf32>
    %36 = arith.mulf %30, %35 : vector<256x128xf32>
    %37 = arith.truncf %36 : vector<256x128xf32> to vector<256x128xbf16>
    %c0_24 = arith.constant 0 : index
    %c0_25 = arith.constant 0 : index
    %38 = vector.load %arg9[%c0_24, %c0_25] : memref<1x128xbf16, #tpu.memory_space<vmem>>, vector<1x128xbf16>
    %cst_26 = arith.constant dense<0.000000e+00> : vector<1x256xf32>
    %39 = tpu.matmul %38, %37, %cst_26 {dimension_numbers = #tpu.dot_dimension_numbers<[1], [1], [0], [0], [0, 0, 1, 0], [], []>} : vector<1x128xbf16>, vector<256x128xbf16>, vector<1x256xf32> -> vector<1x256xf32>
    %c0_27 = arith.constant 0 : index
    %c0_28 = arith.constant 0 : index
    %40 = vector.load %arg10[%c0_27, %c0_28] : memref<1x1xf32, #tpu.memory_space<vmem>>, vector<1x1xf32>
    %41 = vector.broadcast %40 : vector<1x1xf32> to vector<1x256xf32>
    %42 = arith.addf %39, %41 : vector<1x256xf32>
    %43 = arith.negf %42 : vector<1x256xf32>
    %44 = math.exp %43 : vector<1x256xf32>
    %cst_29 = arith.constant 1.000000e+00 : f32
    %45 = vector.broadcast %cst_29 : f32 to vector<1x256xf32>
    %46 = arith.addf %45, %44 : vector<1x256xf32>
    %47 = arith.divf %45, %46 : vector<1x256xf32>
    %c0_30 = arith.constant 0 : index
    %c0_31 = arith.constant 0 : index
    %48 = vector.load %arg11[%c0_30, %c0_31] : memref<1x256xf32, #tpu.memory_space<vmem>>, vector<1x256xf32>
    tpu.vector_store %arg11[%c0_30, %c0_31], %47 {strides = array<i32>} : memref<1x256xf32, #tpu.memory_space<vmem>>, vector<1x256xf32>,
    return
  }
  func.func @transform_0(%arg0: i32, %arg1: memref<1xi32, #tpu.memory_space<smem>>) -> (i32, i32) {
    %c0_i32 = arith.constant 0 : i32
    %c0_i32_0 = arith.constant 0 : i32
    return %arg0, %c0_i32 : i32, i32
  }
  func.func @transform_1(%arg0: i32, %arg1: memref<1xi32, #tpu.memory_space<smem>>) -> (i32, i32) {
    %c0_i32 = arith.constant 0 : i32
    %c0_i32_0 = arith.constant 0 : i32
    %c0_i32_1 = arith.constant 0 : i32
    return %c0_i32, %c0_i32_0 : i32, i32
  }
  func.func @transform_2(%arg0: i32, %arg1: memref<1xi32, #tpu.memory_space<smem>>) -> (i32, i32) {
    %c0_i32 = arith.constant 0 : i32
    %c0_i32_0 = arith.constant 0 : i32
    %c0_i32_1 = arith.constant 0 : i32
    return %c0_i32, %c0_i32_0 : i32, i32
  }
  func.func @transform_3(%arg0: i32, %arg1: memref<1xi32, #tpu.memory_space<smem>>) -> (i32, i32) {
    %c0_i32 = arith.constant 0 : i32
    %c0_i32_0 = arith.constant 0 : i32
    %c0_i32_1 = arith.constant 0 : i32
    return %c0_i32, %c0_i32_0 : i32, i32
  }
  func.func @transform_4(%arg0: i32, %arg1: memref<1xi32, #tpu.memory_space<smem>>) -> (i32, i32) {
    %c0_i32 = arith.constant 0 : i32
    %c0_i32_0 = arith.constant 0 : i32
    %c0_i32_1 = arith.constant 0 : i32
    return %c0_i32, %c0_i32_0 : i32, i32
  }
  func.func @transform_5(%arg0: i32, %arg1: memref<1xi32, #tpu.memory_space<smem>>) -> (i32, i32) {
    %c0_i32 = arith.constant 0 : i32
    %c0_i32_0 = arith.constant 0 : i32
    %c0_i32_1 = arith.constant 0 : i32
    return %c0_i32, %c0_i32_0 : i32, i32
  }
  func.func @transform_6(%arg0: i32, %arg1: memref<1xi32, #tpu.memory_space<smem>>) -> (i32, i32) {
    %c0_i32 = arith.constant 0 : i32
    %c0_i32_0 = arith.constant 0 : i32
    %c0_i32_1 = arith.constant 0 : i32
    return %c0_i32, %c0_i32_0 : i32, i32
  }
  func.func @transform_7(%arg0: i32, %arg1: memref<1xi32, #tpu.memory_space<smem>>) -> (i32, i32) {
    %c0_i32 = arith.constant 0 : i32
    %c0_i32_0 = arith.constant 0 : i32
    %c0_i32_1 = arith.constant 0 : i32
    return %c0_i32, %c0_i32_0 : i32, i32
  }
  func.func @transform_8(%arg0: i32, %arg1: memref<1xi32, #tpu.memory_space<smem>>) -> (i32, i32) {
    %c0_i32 = arith.constant 0 : i32
    %c0_i32_0 = arith.constant 0 : i32
    %c0_i32_1 = arith.constant 0 : i32
    return %c0_i32, %c0_i32_0 : i32, i32
  }
  func.func @transform_9(%arg0: i32, %arg1: memref<1xi32, #tpu.memory_space<smem>>) -> (i32, i32) {
    %c0_i32 = arith.constant 0 : i32
    %c0_i32_0 = arith.constant 0 : i32
    return %c0_i32, %arg0 : i32, i32
  }
}

</mosaic_0001>

<bundles_post_ra>
// kernel: tpu_custom_call.1
= control target key start
LH: loop header
LB: loop body
LE: loop exit
PB: predicated region body
PF: predicated region fallthrough
CT: control target
= control target key end

     0   :  { %s2382_s0 = inlined_call_operand.<no memory space> [shape: s32[1], index: 0, kind: input, shape index: {}]   ;;  %s2383_s1 = inlined_call_operand.hbm [shape: f32[256,64], index: 1, kind: input, shape index: {}]   ;;  %s2384_s2 = inlined_call_operand.hbm [shape: bf16[64,128], index: 2, kind: input, shape index: {}]   ;;  %s2385_s3 = inlined_call_operand.hbm [shape: f32[1,128], index: 3, kind: input, shape index: {}]   ;;  %s2386_s4 = inlined_call_operand.hbm [shape: bf16[128,128], index: 4, kind: input, shape index: {}]   ;;  %s2387_s5 = inlined_call_operand.hbm [shape: f32[1,128], index: 5, kind: input, shape index: {}]   ;;  %s2388_s6 = inlined_call_operand.hbm [shape: bf16[128,128], index: 6, kind: input, shape index: {}]   ;;  %s2389_s7 = inlined_call_operand.hbm [shape: f32[1,128], index: 7, kind: input, shape index: {}]   ;;  %s2390_s8 = inlined_call_operand.hbm [shape: bf16[1,128], index: 8, kind: input, shape index: {}]   ;;  %s2391_s9 = inlined_call_operand.<no memory space> [shape: f32[1,1], index: 9, kind: input, shape index: {}]   ;;  %s2392_s10 = inlined_call_operand.hbm [shape: f32[1,256], index: 10, kind: output, shape index: {}]  }
   0x1   :  { %v16_v0 = vstv %s2391_s9 }
   0x2   :  { %17 = vst [vmem:[#allocation4] sm:$0x1] %v16_v0 }
   0x3   :  { %18 = vsyncpa [#allocation6], 0 }
   0x4   :  { %19 = vsyncpa [#allocation9], 0 }
   0x5   :  { %20 = vsyncpa [#allocation12], 0 }
   0x6   :  { %21 = vsyncpa [#allocation15], 0 }
   0x7   :  { %22 = vsyncpa [#allocation18], 0 }
   0x8   :  { %23 = vsyncpa [#allocation7], 0  ;;  %s1868_s14 = smov [#allocation8]   ;;  %s1658_s18 = scalar_lea.hbm %s2384_s2, 512 }
   0x9   :  { %s41_s15 = sshll.u32 %s1868_s14, 4  ;;  %p1659_p0 = scmp.ne.s32.totalorder %s2384_s2, %s1658_s18  ;;  %s42_s15 = int_to_ptr.vmem [resolvable:$true] %s41_s15 }
   0xa   :  { %p1662_p1 = scmp.lt.u32.totalorder %s1658_s18, %s2384_s2 }
   0xc   :  { %p1664_p2 = pnand %p1662_p1, %p1659_p0 }
   0xe   :  { %1667 = shalt.err (!%p1664_p2)
}
   0xf   :  { %s1668_s22 = scalar_lea.vmem %s42_s15, 512  ;;  %p1673_p4 = scmp.lt.s32.totalorder %s42_s15, %s42_s15 }
  0x10   :  { %p1669_p3 = scmp.ne.s32.totalorder %s42_s15, %s1668_s22  ;;  %p1674_p5 = scmp.lt.s32.totalorder %s1668_s22, %s1668_s22 }
  0x12   :  { %p1675_p6 = por %p1674_p5, %p1673_p4 }
  0x14   :  { %p1676_p7 = pnand %p1675_p6, %p1669_p3 }
  0x16   :  { %1679 = shalt.err (!%p1676_p7)
}
  0x17   :  { %s1869_s23 = smov 64   ;;  %s1870_s24 = smov 4  }
  0x18   :  { %47 = dma.hbm_to_vmem [thread:$0]  %s2384_s2, 512, %s42_s15, [#allocation9], %s1869_s23, %s1869_s23, %s1870_s24  }
  0x19   :  { %s1871_s26 = smov [#allocation11]   ;;  %s1872_s28 = smov [#allocation14]  }
  0x1a   :  { %s63_s27 = sshll.u32 %s1871_s26, 4  ;;  %s85_s29 = sshll.u32 %s1872_s28, 4  ;;  %s64_s27 = int_to_ptr.vmem [resolvable:$true] %s63_s27  ;;  %s86_s29 = int_to_ptr.vmem [resolvable:$true] %s85_s29 }
  0x1b   :  { %s1680_s12 = scalar_lea.hbm %s2386_s4, 1024 }
  0x1c   :  { %p1681_p8 = scmp.ne.s32.totalorder %s2386_s4, %s1680_s12  ;;  %p1684_p9 = scmp.lt.u32.totalorder %s1680_s12, %s2386_s4 }
  0x1e   :  { %p1686_p10 = pnand %p1684_p9, %p1681_p8 }
  0x20   :  { %1689 = shalt.err (!%p1686_p10)
}
  0x21   :  { %s1690_s2 = scalar_lea.vmem %s64_s27, 1024  ;;  %p1695_p12 = scmp.lt.s32.totalorder %s64_s27, %s64_s27 }
  0x22   :  { %p1691_p11 = scmp.ne.s32.totalorder %s64_s27, %s1690_s2  ;;  %p1696_p13 = scmp.lt.s32.totalorder %s1690_s2, %s1690_s2 }
  0x24   :  { %p1697_p0 = por %p1696_p13, %p1695_p12 }
  0x26   :  { %p1698_p1 = pnand %p1697_p0, %p1691_p11 }
  0x28   :  { %1701 = shalt.err (!%p1698_p1)
}
  0x29   :  { %69 = dma.hbm_to_vmem [thread:$0]  %s2386_s4, 1024, %s64_s27, [#allocation12], %s1869_s23, %s1869_s23, %s1870_s24  }
  0x2a   :  { %s1702_s21 = scalar_lea.hbm %s2388_s6, 1024 }
  0x2b   :  { %p1703_p2 = scmp.ne.s32.totalorder %s2388_s6, %s1702_s21  ;;  %p1706_p3 = scmp.lt.u32.totalorder %s1702_s21, %s2388_s6 }
  0x2d   :  { %p1708_p4 = pnand %p1706_p3, %p1703_p2 }
  0x2f   :  { %1711 = shalt.err (!%p1708_p4)
}
  0x30   :  { %s1712_s26 = scalar_lea.vmem %s86_s29, 1024  ;;  %p1717_p6 = scmp.lt.s32.totalorder %s86_s29, %s86_s29 }
  0x31   :  { %p1713_p5 = scmp.ne.s32.totalorder %s86_s29, %s1712_s26  ;;  %p1718_p7 = scmp.lt.s32.totalorder %s1712_s26, %s1712_s26 }
  0x33   :  { %p1719_p8 = por %p1718_p7, %p1717_p6 }
  0x35   :  { %p1720_p9 = pnand %p1719_p8, %p1713_p5 }
  0x37   :  { %1723 = shalt.err (!%p1720_p9)
}
  0x38   :  { %91 = dma.hbm_to_vmem [thread:$0]  %s2388_s6, 1024, %s86_s29, [#allocation15], %s1869_s23, %s1869_s23, %s1870_s24  }
  0x39   :  { %s1873_s28 = smov [#allocation5]   ;;  %s1724_s13 = scalar_lea.hbm %s2383_s1, 4096 }
  0x3a   :  { %s29_s30 = sshll.u32 %s1873_s28, 4  ;;  %p1725_p10 = scmp.ne.s32.totalorder %s2383_s1, %s1724_s13  ;;  %s30_s30 = int_to_ptr.vmem [resolvable:$true] %s29_s30 }
  0x3b   :  { %p1728_p11 = scmp.lt.u32.totalorder %s1724_s13, %s2383_s1 }
  0x3d   :  { %p1730_p12 = pnand %p1728_p11, %p1725_p10 }
  0x3f   :  { %1733 = shalt.err (!%p1730_p12)
}
  0x40   :  { %s1734_s15 = scalar_lea.vmem %s30_s30, 4096  ;;  %p1739_p0 = scmp.lt.s32.totalorder %s30_s30, %s30_s30 }
  0x41   :  { %p1735_p13 = scmp.ne.s32.totalorder %s30_s30, %s1734_s15  ;;  %p1740_p1 = scmp.lt.s32.totalorder %s1734_s15, %s1734_s15 }
  0x43   :  { %p1741_p2 = por %p1740_p1, %p1739_p0 }
  0x45   :  { %p1742_p3 = pnand %p1741_p2, %p1735_p13 }
  0x47   :  { %1745 = shalt.err (!%p1742_p3)
}
  0x48   :  { %s1874_s6 = smov 128   ;;  %s1875_s23 = smov 8  }
  0x49   :  { %35 = dma.hbm_to_vmem [thread:$0]  %s2383_s1, 4096, %s30_s30, [#allocation6], %s1874_s6, %s1874_s6, %s1875_s23  }
  0x4a   :  { %s1876_s18 = smov [#allocation10]   ;;  %s1877_s20 = smov [#allocation13]  }
  0x4b   :  { %s54_s19 = sshll.u32 %s1876_s18, 4  ;;  %s76_s21 = sshll.u32 %s1877_s20, 4  ;;  %s55_s19 = int_to_ptr.vmem [resolvable:$true] %s54_s19  ;;  %s77_s21 = int_to_ptr.vmem [resolvable:$true] %s76_s21 }
  0x4c   :  { %s1746_s25 = scalar_lea.hbm %s2385_s3, 16 }
  0x4d   :  { %p1747_p4 = scmp.ne.s32.totalorder %s2385_s3, %s1746_s25  ;;  %p1750_p5 = scmp.lt.u32.totalorder %s1746_s25, %s2385_s3 }
  0x4f   :  { %p1752_p6 = pnand %p1750_p5, %p1747_p4 }
  0x51   :  { %1755 = shalt.err (!%p1752_p6)
}
  0x52   :  { %s1756_s1 = scalar_lea.vmem %s55_s19, 16  ;;  %s1760_s28 = scalar_lea.vmem %s55_s19, 32 }
  0x53   :  { %p1757_p7 = scmp.ne.s32.totalorder %s55_s19, %s1756_s1  ;;  %p1761_p8 = scmp.lt.s32.totalorder %s55_s19, %s55_s19 }
  0x54   :  { %p1762_p9 = scmp.lt.s32.totalorder %s1760_s28, %s1756_s1 }
  0x56   :  { %p1763_p10 = por %p1762_p9, %p1761_p8 }
  0x58   :  { %p1764_p11 = pnand %p1763_p10, %p1757_p7 }
  0x5a   :  { %1767 = shalt.err (!%p1764_p11)
}
  0x5b   :  { %57 = dma.hbm_to_vmem [thread:$0]  %s2385_s3, 16, %s55_s19, [#allocation9]  }
  0x5c   :  { %s1768_s14 = scalar_lea.hbm %s2387_s5, 16 }
  0x5d   :  { %p1769_p12 = scmp.ne.s32.totalorder %s2387_s5, %s1768_s14  ;;  %p1772_p13 = scmp.lt.u32.totalorder %s1768_s14, %s2387_s5 }
  0x5f   :  { %p1774_p0 = pnand %p1772_p13, %p1769_p12 }
  0x61   :  { %1777 = shalt.err (!%p1774_p0)
}
  0x62   :  { %s1778_s6 = scalar_lea.vmem %s77_s21, 16  ;;  %s1782_s23 = scalar_lea.vmem %s77_s21, 32 }
  0x63   :  { %p1779_p1 = scmp.ne.s32.totalorder %s77_s21, %s1778_s6  ;;  %p1783_p2 = scmp.lt.s32.totalorder %s77_s21, %s77_s21 }
  0x64   :  { %p1784_p3 = scmp.lt.s32.totalorder %s1782_s23, %s1778_s6 }
  0x66   :  { %p1785_p4 = por %p1784_p3, %p1783_p2 }
  0x68   :  { %p1786_p5 = pnand %p1785_p4, %p1779_p1 }
  0x6a   :  { %1789 = shalt.err (!%p1786_p5)
}
  0x6b   :  { %79 = dma.hbm_to_vmem [thread:$0]  %s2387_s5, 16, %s77_s21, [#allocation12]  }
  0x6c   :  { %s1878_s29 = smov [#allocation16]   ;;  %s1879_s19 = smov [#allocation17]  }
  0x6d   :  { %s98_s18 = sshll.u32 %s1878_s29, 4  ;;  %s108_s20 = sshll.u32 %s1879_s19, 4  ;;  %s99_s18 = int_to_ptr.vmem [resolvable:$true] %s98_s18  ;;  %s109_s20 = int_to_ptr.vmem [resolvable:$true] %s108_s20 }
  0x6e   :  { %s1790_s25 = scalar_lea.hbm %s2389_s7, 16 }
  0x6f   :  { %p1791_p6 = scmp.ne.s32.totalorder %s2389_s7, %s1790_s25  ;;  %p1794_p7 = scmp.lt.u32.totalorder %s1790_s25, %s2389_s7 }
  0x71   :  { %p1796_p8 = pnand %p1794_p7, %p1791_p6 }
  0x73   :  { %1799 = shalt.err (!%p1796_p8)
}
  0x74   :  { %s1800_s5 = scalar_lea.vmem %s99_s18, 16  ;;  %s1804_s21 = scalar_lea.vmem %s99_s18, 32 }
  0x75   :  { %p1801_p9 = scmp.ne.s32.totalorder %s99_s18, %s1800_s5  ;;  %p1805_p10 = scmp.lt.s32.totalorder %s99_s18, %s99_s18 }
  0x76   :  { %p1806_p11 = scmp.lt.s32.totalorder %s1804_s21, %s1800_s5 }
  0x78   :  { %p1807_p12 = por %p1806_p11, %p1805_p10 }
  0x7a   :  { %p1808_p13 = pnand %p1807_p12, %p1801_p9 }
  0x7c   :  { %1811 = shalt.err (!%p1808_p13)
}
  0x7d   :  { %101 = dma.hbm_to_vmem [thread:$0]  %s2389_s7, 16, %s99_s18, [#allocation15]  }
  0x7e   :  { %s1812_s12 = scalar_lea.hbm %s2390_s8, 16 }
  0x7f   :  { %p1813_p0 = scmp.ne.s32.totalorder %s2390_s8, %s1812_s12  ;;  %p1816_p1 = scmp.lt.u32.totalorder %s1812_s12, %s2390_s8 }
  0x81   :  { %p1818_p2 = pnand %p1816_p1, %p1813_p0 }
  0x83   :  { %1821 = shalt.err (!%p1818_p2)
}
  0x84   :  { %s1822_s2 = scalar_lea.vmem %s109_s20, 16  ;;  %s1826_s15 = scalar_lea.vmem %s109_s20, 32 }
  0x85   :  { %p1823_p3 = scmp.ne.s32.totalorder %s109_s20, %s1822_s2  ;;  %p1827_p4 = scmp.lt.s32.totalorder %s109_s20, %s109_s20 }
  0x86   :  { %p1828_p5 = scmp.lt.s32.totalorder %s1826_s15, %s1822_s2 }
  0x88   :  { %p1829_p6 = por %p1828_p5, %p1827_p4 }
  0x8a   :  { %p1830_p7 = pnand %p1829_p6, %p1823_p3 }
  0x8c   :  { %1833 = shalt.err (!%p1830_p7)
}
  0x8d   :  { %111 = dma.hbm_to_vmem [thread:$0]  %s2390_s8, 16, %s109_s20, [#allocation18]  }
  0x8e   :  { %1856 = dma.done.wait [#allocation6], 4096  }
  0x8f   :  { %1857 = vsyncadd [#allocation6], 4294963200 }
  0x90   :  { %1858 = dma.done.wait [#allocation9], 528  }
  0x91   :  { %1859 = vsyncadd [#allocation9], 4294966768 }
  0x92   :  { %1860 = dma.done.wait [#allocation12], 1040  }
  0x93   :  { %1861 = vsyncadd [#allocation12], 4294966256 }
  0x94   :  { %1862 = dma.done.wait [#allocation15], 1040  }
  0x95   :  { %1863 = vsyncadd [#allocation15], 4294966256 }
  0x96   :  { %1864 = dma.done.wait [#allocation18], 16  }
  0x97   :  { %1865 = vsyncadd [#allocation18], 4294967280  ;;  %v1630_v1 = vld [vmem:[#allocation8] sm:$0xff]   ;;  %v1631_v2 = vld [vmem:[#allocation8 + $0x8] sm:$0xff]   ;;  %vm226_vm0 = vcmask 523264   ;;  %s1883_s8 = smov [#allocation19]  }
  0x98   :  { %1469 = vmatprep.subr.bf16.mxu0 %v1630_v1  ;;  %1605 = vmatprep.subr.bf16.mxu1 %v1630_v1  ;;  %v1632_v3 = vld [vmem:[#allocation8 + $0x10] sm:$0xff]   ;;  %v139_v4 = vld [vmem:[#allocation5] sm:$0xff]  ;;  %v140_v5 = vld [vmem:[#allocation5 + $0x8] sm:$0xff]  ;;  %s1329_s23 = sshll.u32 %s1883_s8, 4  ;;  %s1330_s23 = int_to_ptr.vmem [resolvable:$true] %s1329_s23 }
  0x99   :  { %1470 = vmatpush3.bf16.msra.mxu0 %v1630_v1  ;;  %1609 = vmatpush3.bf16.msra.mxu1 %v1630_v1  ;;  %v171_v6 = vpack.c.bf16 %v140_v5, %v139_v4  ;;  %v1633_v7 = vld [vmem:[#allocation8 + $0x18] sm:$0xff]   ;;  %v155_v8 = vld [vmem:[#allocation5 + $0x80] sm:$0xff]  ;;  %v156_v9 = vld [vmem:[#allocation5 + $0x88] sm:$0xff]  ;;  %s1834_s3 = scalar_lea.vmem %s1330_s23, 32  ;;  %p1839_p9 = scmp.lt.s32.totalorder %s1330_s23, %s1330_s23 }
  0x9a   :  { %1471 = vmatprep.subr.bf16.mxu0 %v1631_v2  ;;  %1606 = vmatprep.subr.bf16.mxu1 %v1631_v2  ;;  %v179_v10 = vpack.c.bf16 %v156_v9, %v155_v8  ;;  %v141_v11 = vld [vmem:[#allocation5 + $0x10] sm:$0xff]  ;;  %v142_v12 = vld [vmem:[#allocation5 + $0x18] sm:$0xff]  ;;  %v143_v13 = vld [vmem:[#allocation5 + $0x20] sm:$0xff]  ;;  %p1835_p8 = scmp.ne.s32.totalorder %s1330_s23, %s1834_s3  ;;  %p1840_p10 = scmp.lt.s32.totalorder %s1834_s3, %s1834_s3 }
  0x9b   :  { %1477 = vmatprep.mubr.msk.bf16.mxu0 %vm226_vm0, %v171_v6  ;;  %v144_v14 = vld [vmem:[#allocation5 + $0x28] sm:$0xff]  ;;  %v157_v15 = vld [vmem:[#allocation5 + $0x90] sm:$0xff]  ;;  %v158_v16 = vld [vmem:[#allocation5 + $0x98] sm:$0xff]  ;;  %v172_v19 = vpack.c.bf16 %v142_v12, %v141_v11 }
  0x9c   :  { %1493 = vmatprep.mubr.msk.bf16.mxu1 %vm226_vm0, %v179_v10  ;;  %v159_v17 = vld [vmem:[#allocation5 + $0xa0] sm:$0xff]  ;;  %v160_v18 = vld [vmem:[#allocation5 + $0xa8] sm:$0xff]  ;;  %v173_v20 = vpack.c.bf16 %v144_v14, %v143_v13  ;;  %v180_v21 = vpack.c.bf16 %v158_v16, %v157_v15  ;;  %v145_v24 = vld [vmem:[#allocation5 + $0x30] sm:$0xff]  ;;  %v1880_v15 = vmov 0.2   ;;  %p1841_p11 = por %p1840_p10, %p1839_p9 }
  0x9d   :  { %1472 = vmatpush3.bf16.msra.mxu0 %v1631_v2  ;;  %1610 = vmatpush3.bf16.msra.mxu1 %v1631_v2  ;;  %v1634_v22 = vld [vmem:[#allocation11] sm:$0xff]   ;;  %v181_v23 = vpack.c.bf16 %v160_v18, %v159_v17  ;;  %v146_v25 = vld [vmem:[#allocation5 + $0x38] sm:$0xff]  ;;  %v1635_v26 = vld [vmem:[#allocation11 + $0x8] sm:$0xff]  }
  0x9e   :  { %1473 = vmatprep.subr.bf16.mxu0 %v1632_v3  ;;  %1607 = vmatprep.subr.bf16.mxu1 %v1632_v3  ;;  %v147_v27 = vld [vmem:[#allocation5 + $0x40] sm:$0xff]  ;;  %v148_v28 = vld [vmem:[#allocation5 + $0x48] sm:$0xff]  ;;  %v161_v29 = vld [vmem:[#allocation5 + $0xb0] sm:$0xff]  ;;  %v174_v34 = vpack.c.bf16 %v146_v25, %v145_v24  ;;  %p1842_p12 = pnand %p1841_p11, %p1835_p8 }
  0x9f   :  { %v162_v30 = vld [vmem:[#allocation5 + $0xb8] sm:$0xff]  ;;  %v163_v31 = vld [vmem:[#allocation5 + $0xc0] sm:$0xff]  ;;  %v164_v32 = vld [vmem:[#allocation5 + $0xc8] sm:$0xff]  ;;  %v175_v35 = vpack.c.bf16 %v148_v28, %v147_v27 }
  0xa0   :  { %v1636_v33 = vld [vmem:[#allocation11 + $0x10] sm:$0xff]   ;;  %v182_v36 = vpack.c.bf16 %v162_v30, %v161_v29  ;;  %v1637_v37 = vld [vmem:[#allocation11 + $0x18] sm:$0xff]   ;;  %v183_v38 = vpack.c.bf16 %v164_v32, %v163_v31  ;;  %v152_v42 = vld [vmem:[#allocation5 + $0x68] sm:$0xff] }
  0xa1   :  { %1474 = vmatpush3.bf16.msra.mxu0 %v1632_v3  ;;  %1611 = vmatpush3.bf16.msra.mxu1 %v1632_v3  ;;  %v149_v39 = vld [vmem:[#allocation5 + $0x50] sm:$0xff]  ;;  %v150_v40 = vld [vmem:[#allocation5 + $0x58] sm:$0xff]  ;;  %v151_v41 = vld [vmem:[#allocation5 + $0x60] sm:$0xff] }
  0xa2   :  { %1475 = vmatprep.subr.bf16.mxu0 %v1633_v7  ;;  %1608 = vmatprep.subr.bf16.mxu1 %v1633_v7  ;;  %v165_v43 = vld [vmem:[#allocation5 + $0xd0] sm:$0xff]  ;;  %v166_v44 = vld [vmem:[#allocation5 + $0xd8] sm:$0xff]  ;;  %v167_v45 = vld [vmem:[#allocation5 + $0xe0] sm:$0xff]  ;;  %v176_v48 = vpack.c.bf16 %v150_v40, %v149_v39  ;;  %v177_v49 = vpack.c.bf16 %v152_v42, %v151_v41 }
  0xa3   :  { %v168_v46 = vld [vmem:[#allocation5 + $0xe8] sm:$0xff]  ;;  %v184_v50 = vpack.c.bf16 %v166_v44, %v165_v43  ;;  %v153_v52 = vld [vmem:[#allocation5 + $0x70] sm:$0xff]  ;;  %v154_v53 = vld [vmem:[#allocation5 + $0x78] sm:$0xff] }
  0xa4   :  { %v1638_v47 = vld [vmem:[#allocation11 + $0x20] sm:$0xff]   ;;  %v185_v51 = vpack.c.bf16 %v168_v46, %v167_v45  ;;  %v169_v54 = vld [vmem:[#allocation5 + $0xf0] sm:$0xff]  ;;  %v170_v55 = vld [vmem:[#allocation5 + $0xf8] sm:$0xff]  ;;  %v178_v56 = vpack.c.bf16 %v154_v53, %v153_v52 }
  0xa5   :  { %1476 = vmatpush3.bf16.msra.mxu0 %v1633_v7  ;;  %1612 = vmatpush3.bf16.msra.mxu1 %v1633_v7  ;;  %v186_v57 = vpack.c.bf16 %v170_v55, %v169_v54  ;;  %v1639_v58 = vld [vmem:[#allocation11 + $0x28] sm:$0xff]   ;;  %v1640_v59 = vld [vmem:[#allocation11 + $0x30] sm:$0xff]   ;;  %v1641_v60 = vld [vmem:[#allocation11 + $0x38] sm:$0xff]  }
  0xa6   :  { %1509 = vmatprep.subr.bf16.mxu1 %v1634_v22  ;;  %v1642_v61 = vld [vmem:[#allocation14] sm:$0xff]   ;;  %v1643_v62 = vld [vmem:[#allocation14 + $0x8] sm:$0xff]   ;;  %v1644_v63 = vld [vmem:[#allocation14 + $0x10] sm:$0xff]  }
  0xa7   :  { %1557 = vmatprep.subr.bf16.mxu0 %v1642_v61  ;;  %v1645_v0 = vld [vmem:[#allocation14 + $0x18] sm:$0xff]   ;;  %v1646_v1 = vld [vmem:[#allocation14 + $0x20] sm:$0xff]  }
  0xa8   :  { %1478 = vmatmul.mubr.msk.bf16.vlgmr.msra.gmra.mrb[0].mxu0 %vm226_vm0, %v172_v19  ;;  %1494 = vmatmul.mubr.msk.bf16.vlgmr.msra.gmra.mrb[0].mxu1 %vm226_vm0, %v180_v21  ;;  %v2063_v2 = vld [vmem:[#allocation10] ss:$0 sm:$0xff] }
  0xa9   :  { %1481 = vmatprep.mubr.msk.bf16.mxu0 %vm226_vm0, %v173_v20  ;;  %1497 = vmatprep.mubr.msk.bf16.mxu1 %vm226_vm0, %v181_v23 }
  0xaa   :  { %1510 = vmatpush3.bf16.msra.mxu1 %v1634_v22  ;;  %1558 = vmatpush3.bf16.msra.mxu0 %v1642_v61 }
  0xab   :  { %1511 = vmatprep.subr.bf16.mxu1 %v1635_v26  ;;  %1559 = vmatprep.subr.bf16.mxu0 %v1643_v62 }
  0xae   :  { %1512 = vmatpush3.bf16.msra.mxu1 %v1635_v26  ;;  %1560 = vmatpush3.bf16.msra.mxu0 %v1643_v62 }
  0xaf   :  { %1513 = vmatprep.subr.bf16.mxu1 %v1636_v33  ;;  %1561 = vmatprep.subr.bf16.mxu0 %v1644_v63 }
  0xb0   :  { %1482 = vmatmul.mubr.msk.bf16.gmra.mrb[4].mxu0 %vm226_vm0, %v174_v34  ;;  %1498 = vmatmul.mubr.msk.bf16.gmra.mrb[4].mxu1 %vm226_vm0, %v182_v36 }
  0xb1   :  { %1485 = vmatprep.mubr.msk.bf16.mxu0 %vm226_vm0, %v175_v35  ;;  %1501 = vmatprep.mubr.msk.bf16.mxu1 %vm226_vm0, %v183_v38 }
  0xb2   :  { %1514 = vmatpush3.bf16.msra.mxu1 %v1636_v33  ;;  %1562 = vmatpush3.bf16.msra.mxu0 %v1644_v63 }
  0xb3   :  { %1515 = vmatprep.subr.bf16.mxu1 %v1637_v37  ;;  %1563 = vmatprep.subr.bf16.mxu0 %v1645_v0 }
  0xb6   :  { %1516 = vmatpush3.bf16.msra.mxu1 %v1637_v37  ;;  %1564 = vmatpush3.bf16.msra.mxu0 %v1645_v0 }
  0xb7   :  { %1517 = vmatprep.subr.bf16.mxu1 %v1638_v47  ;;  %1565 = vmatprep.subr.bf16.mxu0 %v1646_v1 }
  0xb8   :  { %1486 = vmatmul.mubr.msk.bf16.gmra.mrb[8].mxu0 %vm226_vm0, %v176_v48  ;;  %1502 = vmatmul.mubr.msk.bf16.gmra.mrb[8].mxu1 %vm226_vm0, %v184_v50 }
  0xb9   :  { %1489 = vmatprep.mubr.msk.bf16.mxu0 %vm226_vm0, %v177_v49  ;;  %1505 = vmatprep.mubr.msk.bf16.mxu1 %vm226_vm0, %v185_v51 }
  0xba   :  { %1518 = vmatpush3.bf16.msra.mxu1 %v1638_v47  ;;  %1566 = vmatpush3.bf16.msra.mxu0 %v1646_v1 }
  0xbb   :  { %1519 = vmatprep.subr.bf16.mxu1 %v1639_v58 }
  0xbe   :  { %1520 = vmatpush3.bf16.msra.mxu1 %v1639_v58 }
  0xbf   :  { %1521 = vmatprep.subr.bf16.mxu1 %v1640_v59 }
  0xc0   :  { %1490 = vmatmul.mubr.msk.bf16.gmra.mrb[12].mxu0 %vm226_vm0, %v178_v56  ;;  %1506 = vmatmul.mubr.msk.bf16.gmra.mrb[12].mxu1 %vm226_vm0, %v186_v57 }
  0xc2   :  { %1522 = vmatpush3.bf16.msra.mxu1 %v1640_v59 }
  0xc3   :  { %1523 = vmatprep.subr.bf16.mxu1 %v1641_v60 }
  0xc6   :  { %1524 = vmatpush3.bf16.msra.mxu1 %v1641_v60 }
 0x17b   :  { %v1479_v3 = vpop.f32.mrb[0].mxu0  ;;  %v1495_v6 = vpop.f32.mrb[0].mxu1 }
 0x17c   :  { %v318_v4 = vadd.f32 %v1479_v3, %v2063_v2  ;;  %v309_v5 = vpop.f32.mrb[1].mxu0  ;;  %v382_v9 = vadd.f32 %v1495_v6, %v2063_v2  ;;  %v373_v10 = vpop.f32.mrb[1].mxu1 }
 0x17d   :  { %v310_v7 = vadd.f32 %v2063_v2, %v309_v5  ;;  %v1480_v8 = vpop.f32.mrb[2].mxu0  ;;  %v374_v13 = vadd.f32 %v2063_v2, %v373_v10  ;;  %v1496_v14 = vpop.f32.mrb[2].mxu1 }
 0x17e   :  { %vm438_vm1 = vcmp.gt.f32.partialorder %v318_v4, 0.0  ;;  %v321_v11 = vadd.f32 %v1480_v8, %v2063_v2  ;;  %v312_v12 = vpop.f32.mrb[3].mxu0  ;;  %vm454_vm3 = vcmp.gt.f32.partialorder %v382_v9, 0.0  ;;  %v376_v18 = vpop.f32.mrb[3].mxu1  ;;  %v385_v26 = vadd.f32 %v1496_v14, %v2063_v2 }
 0x17f   :  { %v470_v16 = vsel %vm438_vm1, 1.0, %v1880_v15  ;;  %vm436_vm2 = vcmp.gt.f32.partialorder %v310_v7, 0.0  ;;  %v313_v17 = vadd.f32 %v2063_v2, %v312_v12  ;;  %v486_v20 = vsel %vm454_vm3, 1.0, %v1880_v15 }
 0x180   :  { %v468_v19 = vsel %vm436_vm2, 1.0, %v1880_v15  ;;  %vm439_vm4 = vcmp.gt.f32.partialorder %v321_v11, 0.0  ;;  %v502_v21 = vmul.f32 %v470_v16, %v318_v4  ;;  %vm452_vm6 = vcmp.gt.f32.partialorder %v374_v13, 0.0 }
 0x181   :  { %v500_v22 = vmul.f32 %v468_v19, %v310_v7  ;;  %v471_v23 = vsel %vm439_vm4, 1.0, %v1880_v15  ;;  %vm437_vm5 = vcmp.gt.f32.partialorder %v313_v17, 0.0  ;;  %v2077_v29 = vmul.f32 %v486_v20, %v382_v9 }
 0x182   :  { %v503_v24 = vmul.f32 %v471_v23, %v321_v11  ;;  %v469_v25 = vsel %vm437_vm5, 1.0, %v1880_v15  ;;  %v484_v30 = vsel %vm452_vm6, 1.0, %v1880_v15  ;;  %v377_v31 = vadd.f32 %v2063_v2, %v376_v18 }
 0x183   :  { %v501_v27 = vmul.f32 %v469_v25, %v313_v17  ;;  %v1483_v28 = vpop.f32.mrb[4].mxu0  ;;  %v2082_v35 = vmul.f32 %v484_v30, %v374_v13  ;;  %vm455_vm7 = vcmp.gt.f32.partialorder %v385_v26, 0.0  ;;  %v1499_v36 = vpop.f32.mrb[4].mxu1 }
 0x184   :  { %v533_v32 = vpack.c.bf16 %v503_v24, %v502_v21  ;;  %v334_v33 = vadd.f32 %v1483_v28, %v2063_v2  ;;  %v325_v34 = vpop.f32.mrb[5].mxu0  ;;  %v487_v40 = vsel %vm455_vm7, 1.0, %v1880_v15  ;;  %vm453_vm8 = vcmp.gt.f32.partialorder %v377_v31, 0.0  ;;  %v389_v41 = vpop.f32.mrb[5].mxu1 }
 0x185   :  { %v326_v37 = vadd.f32 %v2063_v2, %v325_v34  ;;  %v1484_v38 = vpop.f32.mrb[6].mxu0  ;;  %v532_v39 = vpack.c.bf16 %v501_v27, %v500_v22  ;;  %v2087_v44 = vmul.f32 %v487_v40, %v385_v26  ;;  %v485_v45 = vsel %vm453_vm8, 1.0, %v1880_v15  ;;  %v1500_v46 = vpop.f32.mrb[6].mxu1 }
 0x186   :  { %vm442_vm9 = vcmp.gt.f32.partialorder %v334_v33, 0.0  ;;  %v337_v42 = vadd.f32 %v1484_v38, %v2063_v2  ;;  %v328_v43 = vpop.f32.mrb[7].mxu0  ;;  %v2092_v49 = vmul.f32 %v485_v45, %v377_v31  ;;  %v392_v50 = vpop.f32.mrb[7].mxu1  ;;  %v398_v53 = vadd.f32 %v1499_v36, %v2063_v2 }
 0x187   :  { %v474_v47 = vsel %vm442_vm9, 1.0, %v1880_v15  ;;  %vm440_vm10 = vcmp.gt.f32.partialorder %v326_v37, 0.0  ;;  %v329_v48 = vadd.f32 %v2063_v2, %v328_v43  ;;  %1525 = vmatprep.mubr.bf16.mxu1 %v532_v39  ;;  %v390_v59 = vadd.f32 %v2063_v2, %v389_v41 }
 0x188   :  { %v506_v51 = vmul.f32 %v474_v47, %v334_v33  ;;  %v472_v52 = vsel %vm440_vm10, 1.0, %v1880_v15  ;;  %vm443_vm11 = vcmp.gt.f32.partialorder %v337_v42, 0.0  ;;  %1526 = vmatmul.mubr.bf16.vlgmr.msra.gmra.mrb[16].mxu1 %v533_v32  ;;  %v540_v56 = vpack.c.bf16 %v2092_v49, %v2082_v35  ;;  %v1648_v35 = vld [vmem:[#allocation14 + $0x30] sm:$0xff]   ;;  %v1649_v49 = vld [vmem:[#allocation14 + $0x38] sm:$0xff]  }
 0x189   :  { %v504_v54 = vmul.f32 %v472_v52, %v326_v37  ;;  %v475_v55 = vsel %vm443_vm11, 1.0, %v1880_v15  ;;  %vm441_vm12 = vcmp.gt.f32.partialorder %v329_v48, 0.0  ;;  %vm458_vm13 = vcmp.gt.f32.partialorder %v398_v53, 0.0 }
 0x18a   :  { %v507_v57 = vmul.f32 %v475_v55, %v337_v42  ;;  %v473_v58 = vsel %vm441_vm12, 1.0, %v1880_v15  ;;  %v490_v62 = vsel %vm458_vm13, 1.0, %v1880_v15  ;;  %v401_v63 = vadd.f32 %v1500_v46, %v2063_v2 }
 0x18b   :  { %v505_v60 = vmul.f32 %v473_v58, %v329_v48  ;;  %v1487_v61 = vpop.f32.mrb[8].mxu0  ;;  %v393_v0 = vadd.f32 %v2063_v2, %v392_v50  ;;  %v2105_v5 = vmul.f32 %v490_v62, %v398_v53  ;;  %vm456_vm14 = vcmp.gt.f32.partialorder %v390_v59, 0.0  ;;  %v1503_v6 = vpop.f32.mrb[8].mxu1 }
 0x18c   :  { %v350_v1 = vadd.f32 %v1487_v61, %v2063_v2  ;;  %v341_v3 = vpop.f32.mrb[9].mxu0  ;;  %v535_v4 = vpack.c.bf16 %v507_v57, %v506_v51  ;;  %v488_v10 = vsel %vm456_vm14, 1.0, %v1880_v15  ;;  %vm459_vm15 = vcmp.gt.f32.partialorder %v401_v63, 0.0  ;;  %v405_v11 = vpop.f32.mrb[9].mxu1 }
 0x18d   :  { %v342_v7 = vadd.f32 %v2063_v2, %v341_v3  ;;  %v1488_v8 = vpop.f32.mrb[10].mxu0  ;;  %v534_v9 = vpack.c.bf16 %v505_v60, %v504_v54  ;;  %v2110_v14 = vmul.f32 %v488_v10, %v390_v59  ;;  %v491_v16 = vsel %vm459_vm15, 1.0, %v1880_v15  ;;  %v1504_v17 = vpop.f32.mrb[10].mxu1 }
 0x18e   :  { %vm446_vm0 = vcmp.gt.f32.partialorder %v350_v1, 0.0  ;;  %v353_v12 = vadd.f32 %v1488_v8, %v2063_v2  ;;  %v344_v13 = vpop.f32.mrb[11].mxu0  ;;  %v2115_v20 = vmul.f32 %v491_v16, %v401_v63  ;;  %v408_v21 = vpop.f32.mrb[11].mxu1  ;;  %vm457_vm3 = vcmp.gt.f32.partialorder %v393_v0, 0.0 }
 0x18f   :  { %v478_v18 = vsel %vm446_vm0, 1.0, %v1880_v15  ;;  %vm444_vm1 = vcmp.gt.f32.partialorder %v342_v7, 0.0  ;;  %v345_v19 = vadd.f32 %v2063_v2, %v344_v13  ;;  %1529 = vmatprep.mubr.bf16.mxu1 %v534_v9  ;;  %v489_v26 = vsel %vm457_vm3, 1.0, %v1880_v15 }
 0x190   :  { %v510_v22 = vmul.f32 %v478_v18, %v350_v1  ;;  %v476_v23 = vsel %vm444_vm1, 1.0, %v1880_v15  ;;  %vm447_vm2 = vcmp.gt.f32.partialorder %v353_v12, 0.0  ;;  %1530 = vmatmul.mubr.bf16.gmra.mrb[20].mxu1 %v535_v4  ;;  %v2121_v30 = vmul.f32 %v489_v26, %v393_v0 }
 0x191   :  { %v508_v24 = vmul.f32 %v476_v23, %v342_v7  ;;  %v479_v25 = vsel %vm447_vm2, 1.0, %v1880_v15  ;;  %vm445_vm4 = vcmp.gt.f32.partialorder %v345_v19, 0.0  ;;  %v541_v31 = vpack.c.bf16 %v2087_v44, %v2077_v29  ;;  %v2162_v29 = vld [vmem:[#allocation13] ss:$0 sm:$0xff] }
 0x192   :  { %v511_v27 = vmul.f32 %v479_v25, %v353_v12  ;;  %v477_v28 = vsel %vm445_vm4, 1.0, %v1880_v15  ;;  %v414_v34 = vadd.f32 %v1503_v6, %v2063_v2  ;;  %v406_v36 = vadd.f32 %v2063_v2, %v405_v11 }
 0x193   :  { %v509_v32 = vmul.f32 %v477_v28, %v345_v19  ;;  %v1491_v33 = vpop.f32.mrb[12].mxu0  ;;  %v417_v37 = vadd.f32 %v1504_v17, %v2063_v2  ;;  %v409_v41 = vadd.f32 %v2063_v2, %v408_v21  ;;  %v542_v42 = vpack.c.bf16 %v2121_v30, %v2110_v14  ;;  %v1507_v43 = vpop.f32.mrb[12].mxu1 }
 0x194   :  { %v366_v38 = vadd.f32 %v1491_v33, %v2063_v2  ;;  %v357_v39 = vpop.f32.mrb[13].mxu0  ;;  %v537_v40 = vpack.c.bf16 %v511_v27, %v510_v22  ;;  %vm462_vm5 = vcmp.gt.f32.partialorder %v414_v34, 0.0  ;;  %vm460_vm6 = vcmp.gt.f32.partialorder %v406_v36, 0.0  ;;  %v421_v48 = vpop.f32.mrb[13].mxu1 }
 0x195   :  { %v358_v45 = vadd.f32 %v2063_v2, %v357_v39  ;;  %v1492_v46 = vpop.f32.mrb[14].mxu0  ;;  %v536_v47 = vpack.c.bf16 %v509_v32, %v508_v24  ;;  %v494_v52 = vsel %vm462_vm5, 1.0, %v1880_v15  ;;  %v492_v53 = vsel %vm460_vm6, 1.0, %v1880_v15  ;;  %v1508_v54 = vpop.f32.mrb[14].mxu1  ;;  %v1647_v32 = vld [vmem:[#allocation14 + $0x28] sm:$0xff]  }
 0x196   :  { %vm450_vm7 = vcmp.gt.f32.partialorder %v366_v38, 0.0  ;;  %v369_v50 = vadd.f32 %v1492_v46, %v2063_v2  ;;  %v360_v51 = vpop.f32.mrb[15].mxu0  ;;  %v526_v58 = vmul.f32 %v494_v52, %v414_v34  ;;  %v424_v59 = vpop.f32.mrb[15].mxu1  ;;  %v524_v62 = vmul.f32 %v492_v53, %v406_v36  ;;  %1567 = vmatprep.subr.bf16.mxu0 %v1647_v32 }
 0x197   :  { %v482_v55 = vsel %vm450_vm7, 1.0, %v1880_v15  ;;  %vm448_vm8 = vcmp.gt.f32.partialorder %v358_v45, 0.0  ;;  %v361_v57 = vadd.f32 %v2063_v2, %v360_v51  ;;  %1533 = vmatprep.mubr.bf16.mxu1 %v536_v47  ;;  %vm463_vm11 = vcmp.gt.f32.partialorder %v417_v37, 0.0  ;;  %1568 = vmatpush3.bf16.msra.mxu0 %v1647_v32 }
 0x198   :  { %v514_v60 = vmul.f32 %v482_v55, %v366_v38  ;;  %v480_v61 = vsel %vm448_vm8, 1.0, %v1880_v15  ;;  %vm451_vm9 = vcmp.gt.f32.partialorder %v369_v50, 0.0  ;;  %1534 = vmatmul.mubr.bf16.gmra.mrb[24].mxu1 %v537_v40  ;;  %v495_v4 = vsel %vm463_vm11, 1.0, %v1880_v15  ;;  %1569 = vmatprep.subr.bf16.mxu0 %v1648_v35 }
 0x199   :  { %v512_v63 = vmul.f32 %v480_v61, %v358_v45  ;;  %v483_v0 = vsel %vm451_vm9, 1.0, %v1880_v15  ;;  %vm449_vm10 = vcmp.gt.f32.partialorder %v361_v57, 0.0  ;;  %vm461_vm12 = vcmp.gt.f32.partialorder %v409_v41, 0.0 }
 0x19a   :  { %v515_v1 = vmul.f32 %v483_v0, %v369_v50  ;;  %v481_v3 = vsel %vm449_vm10, 1.0, %v1880_v15  ;;  %v527_v7 = vmul.f32 %v495_v4, %v417_v37  ;;  %v493_v8 = vsel %vm461_vm12, 1.0, %v1880_v15 }
 0x19b   :  { %v513_v6 = vmul.f32 %v481_v3, %v361_v57  ;;  %v543_v9 = vpack.c.bf16 %v2115_v20, %v2105_v5  ;;  %v525_v11 = vmul.f32 %v493_v8, %v409_v41  ;;  %v430_v12 = vadd.f32 %v1507_v43, %v2063_v2  ;;  %1570 = vmatpush3.bf16.msra.mxu0 %v1648_v35 }
 0x19c   :  { %v539_v10 = vpack.c.bf16 %v515_v1, %v514_v60  ;;  %v422_v13 = vadd.f32 %v2063_v2, %v421_v48  ;;  %v545_v17 = vpack.c.bf16 %v527_v7, %v526_v58  ;;  %v433_v18 = vadd.f32 %v1508_v54, %v2063_v2  ;;  %1571 = vmatprep.subr.bf16.mxu0 %v1649_v49 }
 0x19d   :  { %v538_v16 = vpack.c.bf16 %v513_v6, %v512_v63  ;;  %v425_v19 = vadd.f32 %v2063_v2, %v424_v59  ;;  %v544_v21 = vpack.c.bf16 %v525_v11, %v524_v62  ;;  %vm466_vm13 = vcmp.gt.f32.partialorder %v430_v12, 0.0 }
 0x19e   :  { %vm464_vm14 = vcmp.gt.f32.partialorder %v422_v13, 0.0  ;;  %v498_v22 = vsel %vm466_vm13, 1.0, %v1880_v15  ;;  %vm467_vm15 = vcmp.gt.f32.partialorder %v433_v18, 0.0 }
 0x19f   :  { %1537 = vmatprep.mubr.bf16.mxu1 %v538_v16  ;;  %v496_v5 = vsel %vm464_vm14, 1.0, %v1880_v15  ;;  %vm465_vm0 = vcmp.gt.f32.partialorder %v425_v19, 0.0  ;;  %v530_v20 = vmul.f32 %v498_v22, %v430_v12  ;;  %v499_v24 = vsel %vm467_vm15, 1.0, %v1880_v15  ;;  %1572 = vmatpush3.bf16.msra.mxu0 %v1649_v49 }
 0x1a0   :  { %1538 = vmatmul.mubr.bf16.gmra.mrb[28].mxu1 %v539_v10  ;;  %v528_v23 = vmul.f32 %v496_v5, %v422_v13  ;;  %v497_v25 = vsel %vm465_vm0, 1.0, %v1880_v15  ;;  %v531_v2 = vmul.f32 %v499_v24, %v433_v18 }
 0x1a1   :  { %1541 = vmatprep.mubr.bf16.mxu1 %v540_v56  ;;  %v529_v26 = vmul.f32 %v497_v25, %v425_v19 }
 0x1a2   :  { %v547_v28 = vpack.c.bf16 %v531_v2, %v530_v20 }
 0x1a3   :  { %v546_v27 = vpack.c.bf16 %v529_v26, %v528_v23 }
 0x1a8   :  { %1542 = vmatmul.mubr.bf16.gmra.mrb[32].mxu1 %v541_v31 }
 0x1a9   :  { %1545 = vmatprep.mubr.bf16.mxu1 %v542_v42 }
 0x1b0   :  { %1546 = vmatmul.mubr.bf16.gmra.mrb[36].mxu1 %v543_v9 }
 0x1b1   :  { %1549 = vmatprep.mubr.bf16.mxu1 %v544_v21 }
 0x1b8   :  { %1550 = vmatmul.mubr.bf16.gmra.mrb[40].mxu1 %v545_v17 }
 0x1b9   :  { %1553 = vmatprep.mubr.bf16.mxu1 %v546_v27 }
 0x1c0   :  { %1554 = vmatmul.mubr.bf16.gmra.mrb[44].mxu1 %v547_v28 }
 0x25b   :  { %v1527_v44 = vpop.f32.mrb[16].mxu1 }
 0x25c   :  { %v662_v56 = vadd.f32 %v1527_v44, %v2162_v29  ;;  %v653_v14 = vpop.f32.mrb[17].mxu1 }
 0x25d   :  { %v654_v30 = vadd.f32 %v2162_v29, %v653_v14  ;;  %v1528_v31 = vpop.f32.mrb[18].mxu1 }
 0x25e   :  { %vm782_vm1 = vcmp.gt.f32.partialorder %v662_v56, 0.0  ;;  %v665_v33 = vadd.f32 %v1528_v31, %v2162_v29  ;;  %v656_v34 = vpop.f32.mrb[19].mxu1 }
 0x25f   :  { %v814_v36 = vsel %vm782_vm1, 1.0, %v1880_v15  ;;  %vm780_vm2 = vcmp.gt.f32.partialorder %v654_v30, 0.0  ;;  %v657_v37 = vadd.f32 %v2162_v29, %v656_v34 }
 0x260   :  { %v812_v38 = vsel %vm780_vm2, 1.0, %v1880_v15  ;;  %vm783_vm3 = vcmp.gt.f32.partialorder %v665_v33, 0.0  ;;  %v846_v40 = vmul.f32 %v814_v36, %v662_v56 }
 0x261   :  { %v815_v39 = vsel %vm783_vm3, 1.0, %v1880_v15  ;;  %vm781_vm4 = vcmp.gt.f32.partialorder %v657_v37, 0.0  ;;  %v844_v43 = vmul.f32 %v812_v38, %v654_v30 }
 0x262   :  { %v847_v41 = vmul.f32 %v815_v39, %v665_v33  ;;  %v813_v42 = vsel %vm781_vm4, 1.0, %v1880_v15 }
 0x263   :  { %v845_v45 = vmul.f32 %v813_v42, %v657_v37  ;;  %v1531_v46 = vpop.f32.mrb[20].mxu1 }
 0x264   :  { %v877_v47 = vpack.c.bf16 %v847_v41, %v846_v40  ;;  %v678_v48 = vadd.f32 %v1531_v46, %v2162_v29  ;;  %v669_v50 = vpop.f32.mrb[21].mxu1 }
 0x265   :  { %v670_v51 = vadd.f32 %v2162_v29, %v669_v50  ;;  %v1532_v52 = vpop.f32.mrb[22].mxu1  ;;  %v876_v53 = vpack.c.bf16 %v845_v45, %v844_v43 }
 0x266   :  { %vm786_vm5 = vcmp.gt.f32.partialorder %v678_v48, 0.0  ;;  %v681_v54 = vadd.f32 %v1532_v52, %v2162_v29  ;;  %v672_v55 = vpop.f32.mrb[23].mxu1 }
 0x267   :  { %v818_v57 = vsel %vm786_vm5, 1.0, %v1880_v15  ;;  %vm784_vm6 = vcmp.gt.f32.partialorder %v670_v51, 0.0  ;;  %v673_v58 = vadd.f32 %v2162_v29, %v672_v55  ;;  %1573 = vmatprep.mubr.bf16.mxu0 %v876_v53 }
 0x268   :  { %v816_v59 = vsel %vm784_vm6, 1.0, %v1880_v15  ;;  %vm787_vm7 = vcmp.gt.f32.partialorder %v681_v54, 0.0  ;;  %1574 = vmatmul.mubr.bf16.vlgmr.msra.gmra.mrb[16].mxu0 %v877_v47  ;;  %v850_v61 = vmul.f32 %v818_v57, %v678_v48 }
 0x269   :  { %v819_v60 = vsel %vm787_vm7, 1.0, %v1880_v15  ;;  %vm785_vm8 = vcmp.gt.f32.partialorder %v673_v58, 0.0  ;;  %v848_v0 = vmul.f32 %v816_v59, %v670_v51 }
 0x26a   :  { %v851_v62 = vmul.f32 %v819_v60, %v681_v54  ;;  %v817_v63 = vsel %vm785_vm8, 1.0, %v1880_v15 }
 0x26b   :  { %v849_v1 = vmul.f32 %v817_v63, %v673_v58  ;;  %v1535_v3 = vpop.f32.mrb[24].mxu1 }
 0x26c   :  { %v694_v4 = vadd.f32 %v1535_v3, %v2162_v29  ;;  %v685_v6 = vpop.f32.mrb[25].mxu1  ;;  %v879_v7 = vpack.c.bf16 %v851_v62, %v850_v61 }
 0x26d   :  { %v686_v8 = vadd.f32 %v2162_v29, %v685_v6  ;;  %v1536_v9 = vpop.f32.mrb[26].mxu1  ;;  %v878_v10 = vpack.c.bf16 %v849_v1, %v848_v0 }
 0x26e   :  { %vm790_vm9 = vcmp.gt.f32.partialorder %v694_v4, 0.0  ;;  %v697_v11 = vadd.f32 %v1536_v9, %v2162_v29  ;;  %v688_v12 = vpop.f32.mrb[27].mxu1 }
 0x26f   :  { %v822_v13 = vsel %vm790_vm9, 1.0, %v1880_v15  ;;  %vm788_vm10 = vcmp.gt.f32.partialorder %v686_v8, 0.0  ;;  %v689_v16 = vadd.f32 %v2162_v29, %v688_v12  ;;  %1577 = vmatprep.mubr.bf16.mxu0 %v878_v10 }
 0x270   :  { %v820_v17 = vsel %vm788_vm10, 1.0, %v1880_v15  ;;  %vm791_vm11 = vcmp.gt.f32.partialorder %v697_v11, 0.0  ;;  %1578 = vmatmul.mubr.bf16.gmra.mrb[20].mxu0 %v879_v7  ;;  %v854_v19 = vmul.f32 %v822_v13, %v694_v4 }
 0x271   :  { %v823_v18 = vsel %vm791_vm11, 1.0, %v1880_v15  ;;  %vm789_vm12 = vcmp.gt.f32.partialorder %v689_v16, 0.0  ;;  %v852_v5 = vmul.f32 %v820_v17, %v686_v8 }
 0x272   :  { %v855_v21 = vmul.f32 %v823_v18, %v697_v11  ;;  %v821_v22 = vsel %vm789_vm12, 1.0, %v1880_v15 }
 0x273   :  { %v853_v20 = vmul.f32 %v821_v22, %v689_v16  ;;  %v1539_v23 = vpop.f32.mrb[28].mxu1 }
 0x274   :  { %v710_v24 = vadd.f32 %v1539_v23, %v2162_v29  ;;  %v701_v25 = vpop.f32.mrb[29].mxu1  ;;  %v881_v2 = vpack.c.bf16 %v855_v21, %v854_v19 }
 0x275   :  { %v702_v26 = vadd.f32 %v2162_v29, %v701_v25  ;;  %v1540_v27 = vpop.f32.mrb[30].mxu1  ;;  %v880_v28 = vpack.c.bf16 %v853_v20, %v852_v5 }
 0x276   :  { %vm794_vm13 = vcmp.gt.f32.partialorder %v710_v24, 0.0  ;;  %v713_v32 = vadd.f32 %v1540_v27, %v2162_v29  ;;  %v704_v35 = vpop.f32.mrb[31].mxu1 }
 0x277   :  { %v826_v49 = vsel %vm794_vm13, 1.0, %v1880_v15  ;;  %vm792_vm14 = vcmp.gt.f32.partialorder %v702_v26, 0.0  ;;  %v705_v44 = vadd.f32 %v2162_v29, %v704_v35  ;;  %1581 = vmatprep.mubr.bf16.mxu0 %v880_v28 }
 0x278   :  { %v824_v56 = vsel %vm792_vm14, 1.0, %v1880_v15  ;;  %vm795_vm15 = vcmp.gt.f32.partialorder %v713_v32, 0.0  ;;  %1582 = vmatmul.mubr.bf16.gmra.mrb[24].mxu0 %v881_v2  ;;  %v858_v30 = vmul.f32 %v826_v49, %v710_v24 }
 0x279   :  { %v827_v14 = vsel %vm795_vm15, 1.0, %v1880_v15  ;;  %vm793_vm0 = vcmp.gt.f32.partialorder %v705_v44, 0.0  ;;  %v856_v34 = vmul.f32 %v824_v56, %v702_v26 }
 0x27a   :  { %v859_v31 = vmul.f32 %v827_v14, %v713_v32  ;;  %v825_v33 = vsel %vm793_vm0, 1.0, %v1880_v15 }
 0x27b   :  { %v857_v36 = vmul.f32 %v825_v33, %v705_v44  ;;  %v1543_v37 = vpop.f32.mrb[32].mxu1 }
 0x27c   :  { %v726_v38 = vadd.f32 %v1543_v37, %v2162_v29  ;;  %v717_v39 = vpop.f32.mrb[33].mxu1  ;;  %v883_v40 = vpack.c.bf16 %v859_v31, %v858_v30 }
 0x27d   :  { %v718_v41 = vadd.f32 %v2162_v29, %v717_v39  ;;  %v1544_v42 = vpop.f32.mrb[34].mxu1  ;;  %v882_v43 = vpack.c.bf16 %v857_v36, %v856_v34 }
 0x27e   :  { %vm798_vm1 = vcmp.gt.f32.partialorder %v726_v38, 0.0  ;;  %v729_v45 = vadd.f32 %v1544_v42, %v2162_v29  ;;  %v720_v46 = vpop.f32.mrb[35].mxu1 }
 0x27f   :  { %v830_v47 = vsel %vm798_vm1, 1.0, %v1880_v15  ;;  %vm796_vm2 = vcmp.gt.f32.partialorder %v718_v41, 0.0  ;;  %v721_v48 = vadd.f32 %v2162_v29, %v720_v46  ;;  %1585 = vmatprep.mubr.bf16.mxu0 %v882_v43 }
 0x280   :  { %v828_v50 = vsel %vm796_vm2, 1.0, %v1880_v15  ;;  %vm799_vm3 = vcmp.gt.f32.partialorder %v729_v45, 0.0  ;;  %1586 = vmatmul.mubr.bf16.gmra.mrb[28].mxu0 %v883_v40  ;;  %v862_v52 = vmul.f32 %v830_v47, %v726_v38 }
 0x281   :  { %v831_v51 = vsel %vm799_vm3, 1.0, %v1880_v15  ;;  %vm797_vm4 = vcmp.gt.f32.partialorder %v721_v48, 0.0  ;;  %v860_v55 = vmul.f32 %v828_v50, %v718_v41 }
 0x282   :  { %v863_v53 = vmul.f32 %v831_v51, %v729_v45  ;;  %v829_v54 = vsel %vm797_vm4, 1.0, %v1880_v15  ;;  %v2228_v51 = vld [vmem:[#allocation17] sm:$0x1] }
 0x283   :  { %v861_v57 = vmul.f32 %v829_v54, %v721_v48  ;;  %v1547_v58 = vpop.f32.mrb[36].mxu1  ;;  %1467 = vmatprep.mubr.bf16.mxu1 %v2228_v51 }
 0x284   :  { %v742_v59 = vadd.f32 %v1547_v58, %v2162_v29  ;;  %v733_v60 = vpop.f32.mrb[37].mxu1  ;;  %v885_v61 = vpack.c.bf16 %v863_v53, %v862_v52  ;;  %v1881_v52 = vmov 0   ;;  %v2231_v53 = vld [vmem:[#allocation16] ss:$0 sm:$0xff] }
 0x285   :  { %v734_v62 = vadd.f32 %v2162_v29, %v733_v60  ;;  %v1548_v63 = vpop.f32.mrb[38].mxu1  ;;  %v884_v0 = vpack.c.bf16 %v861_v57, %v860_v55  ;;  %1629 = vset.pattern.permute.xlu0 %v1881_v52 }
 0x286   :  { %vm802_vm5 = vcmp.gt.f32.partialorder %v742_v59, 0.0  ;;  %v745_v1 = vadd.f32 %v1548_v63, %v2162_v29  ;;  %v736_v3 = vpop.f32.mrb[39].mxu1 }
 0x287   :  { %v834_v4 = vsel %vm802_vm5, 1.0, %v1880_v15  ;;  %vm800_vm6 = vcmp.gt.f32.partialorder %v734_v62, 0.0  ;;  %v737_v6 = vadd.f32 %v2162_v29, %v736_v3  ;;  %1589 = vmatprep.mubr.bf16.mxu0 %v884_v0 }
 0x288   :  { %v832_v7 = vsel %vm800_vm6, 1.0, %v1880_v15  ;;  %vm803_vm7 = vcmp.gt.f32.partialorder %v745_v1, 0.0  ;;  %1590 = vmatmul.mubr.bf16.gmra.mrb[32].mxu0 %v885_v61  ;;  %v866_v9 = vmul.f32 %v834_v4, %v742_v59 }
 0x289   :  { %v835_v8 = vsel %vm803_vm7, 1.0, %v1880_v15  ;;  %vm801_vm8 = vcmp.gt.f32.partialorder %v737_v6, 0.0  ;;  %v864_v12 = vmul.f32 %v832_v7, %v734_v62 }
 0x28a   :  { %v867_v10 = vmul.f32 %v835_v8, %v745_v1  ;;  %v833_v11 = vsel %vm801_vm8, 1.0, %v1880_v15 }
 0x28b   :  { %v865_v13 = vmul.f32 %v833_v11, %v737_v6  ;;  %v1551_v16 = vpop.f32.mrb[40].mxu1 }
 0x28c   :  { %v758_v17 = vadd.f32 %v1551_v16, %v2162_v29  ;;  %v749_v18 = vpop.f32.mrb[41].mxu1  ;;  %v887_v19 = vpack.c.bf16 %v867_v10, %v866_v9 }
 0x28d   :  { %v750_v21 = vadd.f32 %v2162_v29, %v749_v18  ;;  %v1552_v22 = vpop.f32.mrb[42].mxu1  ;;  %v886_v5 = vpack.c.bf16 %v865_v13, %v864_v12 }
 0x28e   :  { %vm806_vm9 = vcmp.gt.f32.partialorder %v758_v17, 0.0  ;;  %v761_v20 = vadd.f32 %v1552_v22, %v2162_v29  ;;  %v752_v23 = vpop.f32.mrb[43].mxu1 }
 0x28f   :  { %v838_v24 = vsel %vm806_vm9, 1.0, %v1880_v15  ;;  %vm804_vm10 = vcmp.gt.f32.partialorder %v750_v21, 0.0  ;;  %v753_v25 = vadd.f32 %v2162_v29, %v752_v23  ;;  %1593 = vmatprep.mubr.bf16.mxu0 %v886_v5 }
 0x290   :  { %v870_v2 = vmul.f32 %v838_v24, %v758_v17  ;;  %v836_v26 = vsel %vm804_vm10, 1.0, %v1880_v15  ;;  %vm807_vm11 = vcmp.gt.f32.partialorder %v761_v20, 0.0  ;;  %1594 = vmatmul.mubr.bf16.gmra.mrb[36].mxu0 %v887_v19 }
 0x291   :  { %v868_v27 = vmul.f32 %v836_v26, %v750_v21  ;;  %v839_v28 = vsel %vm807_vm11, 1.0, %v1880_v15  ;;  %vm805_vm12 = vcmp.gt.f32.partialorder %v753_v25, 0.0 }
 0x292   :  { %v871_v32 = vmul.f32 %v839_v28, %v761_v20  ;;  %v837_v35 = vsel %vm805_vm12, 1.0, %v1880_v15 }
 0x293   :  { %v869_v49 = vmul.f32 %v837_v35, %v753_v25  ;;  %v1555_v44 = vpop.f32.mrb[44].mxu1 }
 0x294   :  { %v889_v56 = vpack.c.bf16 %v871_v32, %v870_v2  ;;  %v774_v14 = vadd.f32 %v1555_v44, %v2162_v29  ;;  %v765_v30 = vpop.f32.mrb[45].mxu1 }
 0x295   :  { %v888_v31 = vpack.c.bf16 %v869_v49, %v868_v27  ;;  %v766_v33 = vadd.f32 %v2162_v29, %v765_v30  ;;  %v1556_v34 = vpop.f32.mrb[46].mxu1 }
 0x296   :  { %vm810_vm13 = vcmp.gt.f32.partialorder %v774_v14, 0.0  ;;  %v777_v36 = vadd.f32 %v1556_v34, %v2162_v29  ;;  %v768_v37 = vpop.f32.mrb[47].mxu1 }
 0x297   :  { %1597 = vmatprep.mubr.bf16.mxu0 %v888_v31  ;;  %v842_v38 = vsel %vm810_vm13, 1.0, %v1880_v15  ;;  %vm808_vm14 = vcmp.gt.f32.partialorder %v766_v33, 0.0  ;;  %v769_v39 = vadd.f32 %v2162_v29, %v768_v37  ;;  %v1237_v29 = vld [vmem:[#allocation4] sm:$0x1] }
 0x298   :  { %1598 = vmatmul.mubr.bf16.gmra.mrb[40].mxu0 %v889_v56  ;;  %v874_v40 = vmul.f32 %v842_v38, %v774_v14  ;;  %v840_v41 = vsel %vm808_vm14, 1.0, %v1880_v15  ;;  %vm811_vm15 = vcmp.gt.f32.partialorder %v777_v36, 0.0  ;;  %1240 = vperm.xlu0 %1629, %v1237_v29  }
 0x299   :  { %v872_v42 = vmul.f32 %v840_v41, %v766_v33  ;;  %v843_v43 = vsel %vm811_vm15, 1.0, %v1880_v15  ;;  %vm809_vm0 = vcmp.gt.f32.partialorder %v769_v39, 0.0 }
 0x29a   :  { %v875_v45 = vmul.f32 %v843_v43, %v777_v36  ;;  %v841_v46 = vsel %vm809_vm0, 1.0, %v1880_v15 }
 0x29b   :  { %v873_v47 = vmul.f32 %v841_v46, %v769_v39 }
 0x29c   :  { %v891_v48 = vpack.c.bf16 %v875_v45, %v874_v40 }
 0x29d   :  { %v890_v50 = vpack.c.bf16 %v873_v47, %v872_v42 }
 0x29f   :  { %1601 = vmatprep.mubr.bf16.mxu0 %v890_v50 }
 0x2a0   :  { %1602 = vmatmul.mubr.bf16.gmra.mrb[44].mxu0 %v891_v48 }
 0x33b   :  { %v1575_v54 = vpop.f32.mrb[16].mxu0 }
 0x33c   :  { %v1006_v55 = vadd.f32 %v1575_v54, %v2231_v53  ;;  %v997_v57 = vpop.f32.mrb[17].mxu0 }
 0x33d   :  { %v998_v58 = vadd.f32 %v2231_v53, %v997_v57  ;;  %v1576_v59 = vpop.f32.mrb[18].mxu0 }
 0x33e   :  { %vm1126_vm1 = vcmp.gt.f32.partialorder %v1006_v55, 0.0  ;;  %v1009_v60 = vadd.f32 %v1576_v59, %v2231_v53  ;;  %v1000_v61 = vpop.f32.mrb[19].mxu0 }
 0x33f   :  { %v1158_v62 = vsel %vm1126_vm1, 1.0, %v1880_v15  ;;  %vm1124_vm2 = vcmp.gt.f32.partialorder %v998_v58, 0.0  ;;  %v1001_v63 = vadd.f32 %v2231_v53, %v1000_v61 }
 0x340   :  { %v1156_v0 = vsel %vm1124_vm2, 1.0, %v1880_v15  ;;  %vm1127_vm3 = vcmp.gt.f32.partialorder %v1009_v60, 0.0  ;;  %v2240_v3 = vmul.f32 %v1158_v62, %v1006_v55 }
 0x341   :  { %v1159_v1 = vsel %vm1127_vm3, 1.0, %v1880_v15  ;;  %vm1125_vm4 = vcmp.gt.f32.partialorder %v1001_v63, 0.0  ;;  %v2245_v7 = vmul.f32 %v1156_v0, %v998_v58 }
 0x342   :  { %v2242_v4 = vmul.f32 %v1159_v1, %v1009_v60  ;;  %v1157_v6 = vsel %vm1125_vm4, 1.0, %v1880_v15 }
 0x343   :  { %v2247_v8 = vmul.f32 %v1157_v6, %v1001_v63  ;;  %v1579_v9 = vpop.f32.mrb[20].mxu0 }
 0x344   :  { %v1221_v10 = vpack.c.bf16 %v2242_v4, %v2240_v3  ;;  %v1022_v11 = vadd.f32 %v1579_v9, %v2231_v53  ;;  %v1013_v12 = vpop.f32.mrb[21].mxu0 }
 0x345   :  { %v1220_v13 = vpack.c.bf16 %v2247_v8, %v2245_v7  ;;  %v1014_v16 = vadd.f32 %v2231_v53, %v1013_v12  ;;  %v1580_v17 = vpop.f32.mrb[22].mxu0 }
 0x346   :  { %vm1130_vm5 = vcmp.gt.f32.partialorder %v1022_v11, 0.0  ;;  %v1025_v18 = vadd.f32 %v1580_v17, %v2231_v53  ;;  %v1016_v19 = vpop.f32.mrb[23].mxu0 }
 0x347   :  { %v1162_v21 = vsel %vm1130_vm5, 1.0, %v1880_v15  ;;  %vm1128_vm6 = vcmp.gt.f32.partialorder %v1014_v16, 0.0  ;;  %v1017_v22 = vadd.f32 %v2231_v53, %v1016_v19 }
 0x348   :  { %v1160_v5 = vsel %vm1128_vm6, 1.0, %v1880_v15  ;;  %vm1131_vm7 = vcmp.gt.f32.partialorder %v1025_v18, 0.0  ;;  %v2260_v23 = vmul.f32 %v1162_v21, %v1022_v11 }
 0x349   :  { %v1163_v20 = vsel %vm1131_vm7, 1.0, %v1880_v15  ;;  %vm1129_vm8 = vcmp.gt.f32.partialorder %v1017_v22, 0.0  ;;  %v2265_v2 = vmul.f32 %v1160_v5, %v1014_v16 }
 0x34a   :  { %v2262_v24 = vmul.f32 %v1163_v20, %v1025_v18  ;;  %v1161_v25 = vsel %vm1129_vm8, 1.0, %v1880_v15 }
 0x34b   :  { %v2267_v26 = vmul.f32 %v1161_v25, %v1017_v22  ;;  %v1583_v27 = vpop.f32.mrb[24].mxu0 }
 0x34c   :  { %v1223_v28 = vpack.c.bf16 %v2262_v24, %v2260_v23  ;;  %v1038_v32 = vadd.f32 %v1583_v27, %v2231_v53  ;;  %v1029_v35 = vpop.f32.mrb[25].mxu0  ;;  %v1241_v24 = vpop.permute.xlu0 %1240 }
 0x34d   :  { %v1222_v49 = vpack.c.bf16 %v2267_v26, %v2265_v2  ;;  %v1030_v44 = vadd.f32 %v2231_v53, %v1029_v35  ;;  %v1584_v56 = vpop.f32.mrb[26].mxu0 }
 0x34e   :  { %vm1134_vm9 = vcmp.gt.f32.partialorder %v1038_v32, 0.0  ;;  %v1041_v14 = vadd.f32 %v1584_v56, %v2231_v53  ;;  %v1032_v30 = vpop.f32.mrb[27].mxu0 }
 0x34f   :  { %v1166_v31 = vsel %vm1134_vm9, 1.0, %v1880_v15  ;;  %vm1132_vm10 = vcmp.gt.f32.partialorder %v1030_v44, 0.0  ;;  %v1033_v33 = vadd.f32 %v2231_v53, %v1032_v30 }
 0x350   :  { %v1164_v34 = vsel %vm1132_vm10, 1.0, %v1880_v15  ;;  %vm1135_vm11 = vcmp.gt.f32.partialorder %v1041_v14, 0.0  ;;  %v2280_v37 = vmul.f32 %v1166_v31, %v1038_v32 }
 0x351   :  { %v1167_v36 = vsel %vm1135_vm11, 1.0, %v1880_v15  ;;  %vm1133_vm12 = vcmp.gt.f32.partialorder %v1033_v33, 0.0  ;;  %v2285_v40 = vmul.f32 %v1164_v34, %v1030_v44 }
 0x352   :  { %v2282_v38 = vmul.f32 %v1167_v36, %v1041_v14  ;;  %v1165_v39 = vsel %vm1133_vm12, 1.0, %v1880_v15 }
 0x353   :  { %v2287_v41 = vmul.f32 %v1165_v39, %v1033_v33  ;;  %v1587_v42 = vpop.f32.mrb[28].mxu0 }
 0x354   :  { %v1225_v43 = vpack.c.bf16 %v2282_v38, %v2280_v37  ;;  %v1054_v45 = vadd.f32 %v1587_v42, %v2231_v53  ;;  %v1045_v46 = vpop.f32.mrb[29].mxu0 }
 0x355   :  { %v1224_v47 = vpack.c.bf16 %v2287_v41, %v2285_v40  ;;  %v1046_v48 = vadd.f32 %v2231_v53, %v1045_v46  ;;  %v1588_v50 = vpop.f32.mrb[30].mxu0 }
 0x356   :  { %vm1138_vm13 = vcmp.gt.f32.partialorder %v1054_v45, 0.0  ;;  %v1057_v29 = vadd.f32 %v1588_v50, %v2231_v53  ;;  %v1048_v52 = vpop.f32.mrb[31].mxu0 }
 0x357   :  { %v1170_v54 = vsel %vm1138_vm13, 1.0, %v1880_v15  ;;  %vm1136_vm14 = vcmp.gt.f32.partialorder %v1046_v48, 0.0  ;;  %v1049_v55 = vadd.f32 %v2231_v53, %v1048_v52 }
 0x358   :  { %v1168_v57 = vsel %vm1136_vm14, 1.0, %v1880_v15  ;;  %vm1139_vm15 = vcmp.gt.f32.partialorder %v1057_v29, 0.0  ;;  %v2300_v59 = vmul.f32 %v1170_v54, %v1054_v45 }
 0x359   :  { %v1171_v58 = vsel %vm1139_vm15, 1.0, %v1880_v15  ;;  %vm1137_vm0 = vcmp.gt.f32.partialorder %v1049_v55, 0.0  ;;  %v2305_v62 = vmul.f32 %v1168_v57, %v1046_v48 }
 0x35a   :  { %v2302_v60 = vmul.f32 %v1171_v58, %v1057_v29  ;;  %v1169_v61 = vsel %vm1137_vm0, 1.0, %v1880_v15 }
 0x35b   :  { %v2307_v63 = vmul.f32 %v1169_v61, %v1049_v55  ;;  %v1591_v0 = vpop.f32.mrb[32].mxu0 }
 0x35c   :  { %v1227_v1 = vpack.c.bf16 %v2302_v60, %v2300_v59  ;;  %v1070_v6 = vadd.f32 %v1591_v0, %v2231_v53  ;;  %v1061_v9 = vpop.f32.mrb[33].mxu0 }
 0x35d   :  { %v1226_v11 = vpack.c.bf16 %v2307_v63, %v2305_v62  ;;  %v1062_v12 = vadd.f32 %v2231_v53, %v1061_v9  ;;  %v1592_v16 = vpop.f32.mrb[34].mxu0 }
 0x35e   :  { %vm1142_vm1 = vcmp.gt.f32.partialorder %v1070_v6, 0.0  ;;  %v1073_v17 = vadd.f32 %v1592_v16, %v2231_v53  ;;  %v1064_v18 = vpop.f32.mrb[35].mxu0 }
 0x35f   :  { %v1174_v19 = vsel %vm1142_vm1, 1.0, %v1880_v15  ;;  %vm1140_vm2 = vcmp.gt.f32.partialorder %v1062_v12, 0.0  ;;  %v1065_v21 = vadd.f32 %v2231_v53, %v1064_v18 }
 0x360   :  { %v1172_v22 = vsel %vm1140_vm2, 1.0, %v1880_v15  ;;  %vm1143_vm3 = vcmp.gt.f32.partialorder %v1073_v17, 0.0  ;;  %v1206_v20 = vmul.f32 %v1174_v19, %v1070_v6 }
 0x361   :  { %v1175_v5 = vsel %vm1143_vm3, 1.0, %v1880_v15  ;;  %vm1141_vm4 = vcmp.gt.f32.partialorder %v1065_v21, 0.0  ;;  %v1204_v32 = vmul.f32 %v1172_v22, %v1062_v12 }
 0x362   :  { %v1207_v25 = vmul.f32 %v1175_v5, %v1073_v17  ;;  %v1173_v27 = vsel %vm1141_vm4, 1.0, %v1880_v15 }
 0x363   :  { %v1205_v35 = vmul.f32 %v1173_v27, %v1065_v21  ;;  %v1595_v44 = vpop.f32.mrb[36].mxu0 }
 0x364   :  { %v1086_v56 = vadd.f32 %v1595_v44, %v2231_v53  ;;  %v1077_v14 = vpop.f32.mrb[37].mxu0  ;;  %v1229_v30 = vpack.c.bf16 %v1207_v25, %v1206_v20 }
 0x365   :  { %v1078_v31 = vadd.f32 %v2231_v53, %v1077_v14  ;;  %v1596_v33 = vpop.f32.mrb[38].mxu0  ;;  %v1228_v34 = vpack.c.bf16 %v1205_v35, %v1204_v32 }
 0x366   :  { %vm1146_vm5 = vcmp.gt.f32.partialorder %v1086_v56, 0.0  ;;  %v1089_v36 = vadd.f32 %v1596_v33, %v2231_v53  ;;  %v1080_v39 = vpop.f32.mrb[39].mxu0 }
 0x367   :  { %v1178_v42 = vsel %vm1146_vm5, 1.0, %v1880_v15  ;;  %vm1144_vm6 = vcmp.gt.f32.partialorder %v1078_v31, 0.0  ;;  %v1081_v45 = vadd.f32 %v2231_v53, %v1080_v39  ;;  %1451 = vmatprep.subr.bf16.mxu1 %v1228_v34 }
 0x368   :  { %v1176_v46 = vsel %vm1144_vm6, 1.0, %v1880_v15  ;;  %vm1147_vm7 = vcmp.gt.f32.partialorder %v1089_v36, 0.0  ;;  %1452 = vmatpush3.bf16.xpose.msra.mxu1 %v1220_v13  ;;  %v1210_v50 = vmul.f32 %v1178_v42, %v1086_v56 }
 0x369   :  { %v1179_v48 = vsel %vm1147_vm7, 1.0, %v1880_v15  ;;  %vm1145_vm8 = vcmp.gt.f32.partialorder %v1081_v45, 0.0  ;;  %1453 = vmatprep.subr.bf16.mxu1 %v1229_v30  ;;  %v1208_v54 = vmul.f32 %v1176_v46, %v1078_v31 }
 0x36a   :  { %v1211_v29 = vmul.f32 %v1179_v48, %v1089_v36  ;;  %v1177_v52 = vsel %vm1145_vm8, 1.0, %v1880_v15 }
 0x36b   :  { %v1209_v55 = vmul.f32 %v1177_v52, %v1081_v45  ;;  %v1599_v57 = vpop.f32.mrb[40].mxu0 }
 0x36c   :  { %v1102_v58 = vadd.f32 %v1599_v57, %v2231_v53  ;;  %v1093_v61 = vpop.f32.mrb[41].mxu0  ;;  %v1231_v0 = vpack.c.bf16 %v1211_v29, %v1210_v50 }
 0x36d   :  { %v1094_v6 = vadd.f32 %v2231_v53, %v1093_v61  ;;  %v1600_v9 = vpop.f32.mrb[42].mxu0  ;;  %v1230_v7 = vpack.c.bf16 %v1209_v55, %v1208_v54 }
 0x36e   :  { %vm1150_vm9 = vcmp.gt.f32.partialorder %v1102_v58, 0.0  ;;  %v1105_v8 = vadd.f32 %v1600_v9, %v2231_v53  ;;  %v1096_v13 = vpop.f32.mrb[43].mxu0 }
 0x36f   :  { %v1182_v12 = vsel %vm1150_vm9, 1.0, %v1880_v15  ;;  %vm1148_vm10 = vcmp.gt.f32.partialorder %v1094_v6, 0.0  ;;  %v1097_v16 = vadd.f32 %v2231_v53, %v1096_v13 }
 0x370   :  { %v1214_v17 = vmul.f32 %v1182_v12, %v1102_v58  ;;  %v1180_v18 = vsel %vm1148_vm10, 1.0, %v1880_v15  ;;  %vm1151_vm11 = vcmp.gt.f32.partialorder %v1105_v8, 0.0  ;;  %1454 = vmatpush3.bf16.xpose.msra.mxu1 %v1221_v10 }
 0x371   :  { %v1212_v19 = vmul.f32 %v1180_v18, %v1094_v6  ;;  %v1183_v21 = vsel %vm1151_vm11, 1.0, %v1880_v15  ;;  %vm1149_vm12 = vcmp.gt.f32.partialorder %v1097_v16, 0.0  ;;  %1455 = vmatprep.subr.bf16.mxu1 %v1230_v7 }
 0x372   :  { %v1215_v22 = vmul.f32 %v1183_v21, %v1105_v8  ;;  %v1181_v5 = vsel %vm1149_vm12, 1.0, %v1880_v15 }
 0x373   :  { %v1213_v20 = vmul.f32 %v1181_v5, %v1097_v16  ;;  %v1603_v25 = vpop.f32.mrb[44].mxu0 }
 0x374   :  { %v1118_v27 = vadd.f32 %v1603_v25, %v2231_v53  ;;  %v1109_v32 = vpop.f32.mrb[45].mxu0  ;;  %v1233_v35 = vpack.c.bf16 %v1215_v22, %v1214_v17 }
 0x375   :  { %v1110_v44 = vadd.f32 %v2231_v53, %v1109_v32  ;;  %v1604_v56 = vpop.f32.mrb[46].mxu0  ;;  %v1232_v14 = vpack.c.bf16 %v1213_v20, %v1212_v19 }
 0x376   :  { %vm1154_vm13 = vcmp.gt.f32.partialorder %v1118_v27, 0.0  ;;  %v1121_v3 = vadd.f32 %v1604_v56, %v2231_v53  ;;  %v1112_v4 = vpop.f32.mrb[47].mxu0 }
 0x377   :  { %v1186_v10 = vsel %vm1154_vm13, 1.0, %v1880_v15  ;;  %vm1152_vm14 = vcmp.gt.f32.partialorder %v1110_v44, 0.0  ;;  %v1113_v30 = vadd.f32 %v2231_v53, %v1112_v4 }
 0x378   :  { %1456 = vmatpush3.bf16.xpose.msra.mxu1 %v1222_v49  ;;  %v1218_v31 = vmul.f32 %v1186_v10, %v1118_v27  ;;  %v1184_v33 = vsel %vm1152_vm14, 1.0, %v1880_v15  ;;  %vm1155_vm15 = vcmp.gt.f32.partialorder %v1121_v3, 0.0 }
 0x379   :  { %1457 = vmatprep.subr.bf16.mxu1 %v1231_v0  ;;  %v1216_v34 = vmul.f32 %v1184_v33, %v1110_v44  ;;  %v1187_v36 = vsel %vm1155_vm15, 1.0, %v1880_v15  ;;  %vm1153_vm0 = vcmp.gt.f32.partialorder %v1113_v30, 0.0 }
 0x37a   :  { %v1219_v39 = vmul.f32 %v1187_v36, %v1121_v3  ;;  %v1185_v42 = vsel %vm1153_vm0, 1.0, %v1880_v15  ;;  %v1243_v15 = vlaneseq }
 0x37b   :  { %v1217_v45 = vmul.f32 %v1185_v42, %v1113_v30 }
 0x37c   :  { %v1235_v46 = vpack.c.bf16 %v1219_v39, %v1218_v31  ;;  %v1244_v53 = vshrl.u32 %v1243_v15, 7  ;;  %vm1320_vm1 = vcmp.lt.s32.totalorder %v1243_v15, 256 }
 0x37d   :  { %v1234_v48 = vpack.c.bf16 %v1217_v45, %v1216_v34 }
 0x37e   :  { %v1245_v23 = vsub.s32 0, %v1244_v53 }
 0x380   :  { %1458 = vmatpush3.bf16.xpose.msra.mxu1 %v1223_v28  ;;  %v1246_v2 = vrot.slane %v1241_v24, %v1245_v23 }
 0x381   :  { %1459 = vmatprep.subr.bf16.mxu1 %v1232_v14 }
 0x388   :  { %1460 = vmatpush3.bf16.xpose.msra.mxu1 %v1224_v47 }
 0x389   :  { %1461 = vmatprep.subr.bf16.mxu1 %v1233_v35 }
 0x390   :  { %1462 = vmatpush3.bf16.xpose.msra.mxu1 %v1225_v43 }
 0x391   :  { %1463 = vmatprep.subr.bf16.mxu1 %v1234_v48 }
 0x398   :  { %1464 = vmatpush3.bf16.xpose.msra.mxu1 %v1226_v11 }
 0x399   :  { %1465 = vmatprep.subr.bf16.mxu1 %v1235_v46 }
 0x3a0   :  { %1466 = vmatpush3.bf16.xpose.msra.mxu1 %v1227_v1 }
 0x3a7   :  { %1468 = vmatmul.mubr.bf16.vlgmr.msra.gmra.mrb[48].mxu1 %v2228_v51  ;;  %v1882_v51 = vmov 1966171168  }
 0x3a8   :  { %v1304_v63 = vunpack.c.l.s4 %v1882_v51 }
 0x3aa   :  { %v1305_v1 = vunpack.c.0.s8 %v1304_v63 }
 0x3ac   :  { %v1308_v50 = vsub.s32 %v1305_v1, %v1244_v53 }
 0x47a   :  { %v1281_v26 = vpop.f32.mrb[48].mxu1 }
 0x47b   :  { %v1282_v28 = vadd.f32 %v1281_v26, %v1246_v2  ;;  %v1283_v49 = vpop.f32.mrb[49].mxu1 }
 0x47c   :  { %v1284_v37 = vadd.f32 %v1283_v49, %v1246_v2  ;;  %v1285_v38 = vpop.f32.mrb[50].mxu1 }
 0x47d   :  { %v1381_v40 = vmul.f32 -1.442695, %v1282_v28  ;;  %v1286_v41 = vpop.f32.mrb[51].mxu1 }
 0x47e   :  { %v1382_v43 = vmul.f32 -1.442695, %v1284_v37 }
 0x47f   :  { %1650 = vpow2.f32 %v1381_v40 }
 0x480   :  { %1652 = vpow2.f32 %v1382_v43 }
 0x489   :  { %v1651_v47 = vpop.eup %1650 }
 0x48a   :  { %v1653_v59 = vpop.eup %1652  ;;  %v1294_v60 = vadd.f32 1.0, %v1651_v47 }
 0x48b   :  { %v1295_v62 = vadd.f32 1.0, %v1653_v59 }
 0x48c   :  { %1654 = vrcp.f32 %v1294_v60 }
 0x48d   :  { %1656 = vrcp.f32 %v1295_v62 }
 0x496   :  { %v1655_v11 = vpop.eup %1654 }
 0x497   :  { %v1657_v29 = vpop.eup %1656 }
 0x498   :  { %v1302_v52 = vcombine.low %v1655_v11, %v1657_v29 }
 0x49a   :  { %v1309_v54 = vrot.slane %v1302_v52, %v1308_v50 }
 0x49c   :  { %v1316_v55 = vrot.slane %v1309_v54, %v1308_v50 }
 0x49e   :  { %1322 = vst.msk [vmem:[#allocation19] sm:$0x3] %vm1320_vm1, %v1316_v55 }
 0x49f   :  { %1845 = shalt.err (!%p1842_p12)
}
 0x4a0   :  { %s1846_s18 = scalar_lea.hbm %s2392_s10, 32 }
 0x4a1   :  { %p1847_p13 = scmp.ne.s32.totalorder %s2392_s10, %s1846_s18  ;;  %p1850_p0 = scmp.lt.u32.totalorder %s1846_s18, %s2392_s10 }
 0x4a3   :  { %p1852_p1 = pnand %p1850_p0, %p1847_p13 }
 0x4a5   :  { %1855 = shalt.err (!%p1852_p1)
}
 0x4a6   :  { %1332 = dma.vmem_to_hbm [thread:$0]  %s1330_s23, 32, %s2392_s10, [#allocation7]  }
 0x4a7   :  { %1866 = dma.done.wait [#allocation7], 32  }
 0x4a8   :  { %1867 = vsyncadd [#allocation7], 4294967264 }
 0x4a9   :  { %1336 = vsyncpa [#allocation6], 1 }
 0x4aa   :  { %1337 = vsyncpa [#allocation9], 1 }
 0x4ab   :  { %1338 = vsyncpa [#allocation12], 1 }
 0x4ac   :  { %1339 = vsyncpa [#allocation15], 1 }
 0x4ad   :  { %1340 = vsyncpa [#allocation18], 1 }
 0x4ae   :  { %1341 = vsyncpa [#allocation7], 1 }

</bundles_post_ra>
